<compile_context>
chip_gen: v7x
topology: tpu7x:2x2x1
jax: 0.10.0
libtpu: 0.0.40
codegen_flags: <defaults>
</compile_context>

<pallas_src>
import functools

import jax
import jax.numpy as jnp
from jax.experimental import pallas as pl
from jax.experimental.pallas import tpu as pltpu


def _round_up(a: int, b: int) -> int:
    return ((a + b - 1) // b) * b


def _cdiv(a: int, b: int) -> int:
    return (a + b - 1) // b


def _attention_kernel(x_ref, wbig_ref, bbig_ref, esum_ref, eexp_ref, eout_ref,
                      wp_ref, bp_ref, out_ref, *, num_heads):
    """One row block: fused qkv -> per-token heads-softmax -> fused proj."""
    H = num_heads
    n_exp = esum_ref.shape[0]          # G * H * dim   (expanded (g,i,j,d) lanes)
    grp = esum_ref.shape[1] // H       # G * H         (softmax group width)
    cdt = wbig_ref.dtype               # compute dtype for all MXU operands

    x = x_ref[...]                     # already compute_dtype

    # Fused, pre-expanded QKV projection: one wide MXU matmul + one bias add.
    # Operands and output in compute_dtype (MXU accumulates internally in f32).
    big = jnp.dot(x, wbig_ref[...]) + bbig_ref[...]
    q_rep = big[:, 0 * n_exp:1 * n_exp]     # q[g, i, d] replicated over j
    k_til = big[:, 1 * n_exp:2 * n_exp]     # k[g, j, d] replicated over i
    v_til = big[:, 2 * n_exp:3 * n_exp]     # v[g, j, d] replicated over i

    # Scores: lane-dense multiply + matmul with a constant 0/1 reduce matrix
    # (qk scale is folded into e_sum).  Columns are j-major so every softmax
    # group is a contiguous lane slice.  Accumulate scores in f32.
    s = jnp.dot(q_rep * k_til, esum_ref[...],
                preferred_element_type=jnp.float32)

    # Softmax over the key-head axis j (H contiguous groups of width grp), f32.
    m = s[:, 0:grp]
    for j in range(1, H):
        m = jnp.maximum(m, s[:, j * grp:(j + 1) * grp])
    p = jnp.exp(s - jnp.concatenate([m] * H, axis=1))
    den = p[:, 0:grp]
    for j in range(1, H):
        den = den + p[:, j * grp:(j + 1) * grp]
    pn = (p * jnp.concatenate([1.0 / den] * H, axis=1)).astype(cdt)

    # P @ V: expand probs back onto the (g,i,j,d) lanes, multiply by v, sum j.
    p_exp = jnp.dot(pn, eexp_ref[...])            # compute_dtype, values in [0,1]
    o = jnp.dot(p_exp * v_til, eout_ref[...])     # compute_dtype

    # Fused output projection (block-diagonal over the folded tokens),
    # f32 accumulation + f32 bias.
    out = jnp.dot(o, wp_ref[...], preferred_element_type=jnp.float32) + bp_ref[...]
    out_ref[...] = out.astype(out_ref.dtype)


def prepare_attention_params(params, num_heads, scale, *,
                             compute_dtype=jnp.float32):
    """One-time weight glue (hoisted out of the hot path).

    G = max(1, 128 // dim) tokens are folded into every kernel row for lane
    density.  Expanded lane index: e = g*(H*dim) + i*dim + j*hd + d.
    """
    w_qkv, b_qkv, w_proj, b_proj = params
    dim = w_proj.shape[0]
    H = num_heads
    assert dim % H == 0, "dim must be divisible by num_heads"
    hd = dim // H
    if dim <= 128:
        assert 128 % dim == 0, "lane folding assumes dim divides 128"
    else:
        assert dim % 128 == 0, "dim > 128 must be a multiple of 128"
    G = max(1, 128 // dim)

    wqkv_t = w_qkv.T.astype(jnp.float32)                   # (dim, 3*dim)
    wq_t = wqkv_t[:, 0:dim]
    wk_t = wqkv_t[:, dim:2 * dim]
    wv_t = wqkv_t[:, 2 * dim:3 * dim]
    bq = b_qkv[0:dim].astype(jnp.float32)
    bk = b_qkv[dim:2 * dim].astype(jnp.float32)
    bv = b_qkv[2 * dim:3 * dim].astype(jnp.float32)

    # Within-token expanded index t = i*dim + j*hd + d.
    t = jnp.arange(H * dim)
    i_t, r_t = t // dim, t % dim
    d_t = r_t % hd
    src_q = i_t * hd + d_t          # q column feeding lane t
    src_k = r_t                     # k/v column feeding lane t (= j*hd + d)

    eye_g = jnp.eye(G, dtype=jnp.float32)

    def _fold(w_expanded):          # (dim, H*dim) -> block-diag (G*dim, G*H*dim)
        return jnp.einsum('ab,cd->acbd', eye_g, w_expanded).reshape(
            G * dim, G * H * dim)

    w_big = jnp.concatenate(
        [_fold(wq_t[:, src_q]), _fold(wk_t[:, src_k]), _fold(wv_t[:, src_k])],
        axis=1)
    b_big = jnp.concatenate(
        [jnp.tile(bq[src_q], G), jnp.tile(bk[src_k], G), jnp.tile(bv[src_k], G)]
    )[None, :]

    # Full expanded lane index (with the fold position g).
    e = jnp.arange(G * H * dim)
    g_e, t_e = e // (H * dim), e % (H * dim)
    i_e, r_e = t_e // dim, t_e % dim
    j_e, d_e = r_e // hd, r_e % hd
    pair = j_e * (G * H) + g_e * H + i_e      # score column (j-major)
    ocol = g_e * dim + i_e * hd + d_e         # folded attention-output column

    onehot_pair = (pair[:, None] == jnp.arange(G * H * H)[None, :]
                   ).astype(jnp.float32)
    e_sum = onehot_pair * jnp.float32(scale)  # fold the qk scale in here
    e_exp = onehot_pair.T
    e_out = (ocol[:, None] == jnp.arange(G * dim)[None, :]).astype(jnp.float32)

    wp_f = jnp.einsum('ab,cd->acbd', eye_g,
                      w_proj.T.astype(jnp.float32)).reshape(G * dim, G * dim)
    bp_f = jnp.tile(b_proj.astype(jnp.float32), G)[None, :]

    # All MXU operands in compute_dtype (bf16 on v6e/v7x).  b_proj stays f32
    # so the final projection adds in f32.
    return dict(
        G=G, dim=dim, num_heads=H, compute_dtype=compute_dtype,
        w_big=w_big.astype(compute_dtype), b_big=b_big.astype(compute_dtype),
        e_sum=e_sum.astype(compute_dtype), e_exp=e_exp.astype(compute_dtype),
        e_out=e_out.astype(compute_dtype),
        w_proj=wp_f.astype(compute_dtype), b_proj=bp_f)


def attention_forward(x, prepped, *, tm=1024):
    """x: (B, N, dim) float32.  prepped: prepare_attention_params output."""
    B, N, dim = x.shape
    assert dim == prepped['dim']
    H = prepped['num_heads']
    G = prepped['G']
    cdt = prepped['compute_dtype']
    M = B * N
    width = G * dim

    # --- tile sizing -------------------------------------------------------
    rows_needed = _cdiv(M, G)
    tm_req = max(8, _round_up(int(tm), 8))
    if rows_needed >= 16:
        # Keep at least 2 grid blocks so the "parallel" axis can feed both
        # v7x TensorCores; otherwise use one full-size block.
        tm_eff = min(tm_req, _round_up(_cdiv(rows_needed, 2), 8))
    else:
        tm_eff = _round_up(rows_needed, 8)
    rows = _round_up(rows_needed, tm_eff)   # no partial last grid block
    Mp = rows * G

    # Fold G tokens per kernel row (lane density); zero-pad to the tile grid.
    x2 = x.reshape(M, dim)
    if Mp != M:
        x2 = jnp.pad(x2, ((0, Mp - M), (0, 0)))
    xf = x2.reshape(rows, width).astype(cdt)

    grid = (rows // tm_eff,)

    n_exp = prepped['e_sum'].shape[0]      # G * H * dim
    n_pair = prepped['e_sum'].shape[1]     # G * H * H
    n_big = prepped['w_big'].shape[1]      # 3 * n_exp

    # Advisory cost estimate so XLA schedules around the custom call.
    flops_per_row = 2 * (width * n_big + n_exp * n_pair + n_pair * n_exp
                         + n_exp * width + width * width)
    const_bytes = 0
    for name in ('w_big', 'b_big', 'e_sum', 'e_exp', 'e_out', 'w_proj', 'b_proj'):
        arr = prepped[name]
        const_bytes += int(arr.size) * arr.dtype.itemsize
    cost = pl.CostEstimate(
        flops=int(flops_per_row) * int(rows),
        transcendentals=int(rows) * int(n_pair),
        bytes_accessed=int(rows) * int(width) * (xf.dtype.itemsize
                                                 + jnp.dtype(x.dtype).itemsize)
                       + const_bytes)

    kernel = functools.partial(_attention_kernel, num_heads=H)

    outf = pl.pallas_call(
        kernel,
        out_shape=jax.ShapeDtypeStruct((rows, width), x.dtype),
        grid_spec=pltpu.PrefetchScalarGridSpec(
            num_scalar_prefetch=0,
            grid=grid,
            in_specs=[
                pl.BlockSpec((tm_eff, width), lambda i: (i, 0)),   # x rows
                # Constant-index weight blocks: fetched once, VMEM-resident
                # across the grid (~1 MiB total in bf16 at dim=32).
                pl.BlockSpec((width, n_big), lambda i: (0, 0)),    # w_big
                pl.BlockSpec((1, n_big), lambda i: (0, 0)),        # b_big
                pl.BlockSpec((n_exp, n_pair), lambda i: (0, 0)),   # e_sum
                pl.BlockSpec((n_pair, n_exp), lambda i: (0, 0)),   # e_exp
                pl.BlockSpec((n_exp, width), lambda i: (0, 0)),    # e_out
                pl.BlockSpec((width, width), lambda i: (0, 0)),    # w_proj
                pl.BlockSpec((1, width), lambda i: (0, 0)),        # b_proj
            ],
            out_specs=pl.BlockSpec((tm_eff, width), lambda i: (i, 0)),
        ),
        compiler_params=pltpu.CompilerParams(
            dimension_semantics=("parallel",),          # independent row blocks
            vmem_limit_bytes=64 * 1024 * 1024),         # safe on v5e/v6e/v7x
        cost_estimate=cost,
    )(xf, prepped['w_big'], prepped['b_big'], prepped['e_sum'],
      prepped['e_exp'], prepped['e_out'], prepped['w_proj'], prepped['b_proj'])

    return outf.reshape(Mp, dim)[:M].reshape(B, N, dim)


def reference(x, params, num_heads, scale):
    """Pure-JAX re-implementation of the PyTorch forward (eval / dropout=0)."""
    w_qkv, b_qkv, w_proj, b_proj = params
    B, N, dim = x.shape
    hd = dim // num_heads
    qkv = x @ w_qkv.T + b_qkv
    q, k, v = jnp.split(qkv, 3, axis=-1)
    q = q.reshape(B, N, num_heads, hd)
    k = k.reshape(B, N, num_heads, hd)
    v = v.reshape(B, N, num_heads, hd)
    # SDPA without head transpose -> attention over the heads axis per token.
    s = jnp.einsum('bnhd,bngd->bnhg', q, k) * scale
    p = jax.nn.softmax(s, axis=-1)
    o = jnp.einsum('bnhg,bngd->bnhd', p, v).reshape(B, N, dim)
    return o @ w_proj.T + b_proj


if __name__ == "__main__":
    # Attention(dim=32, num_heads=4, qkv_bias=True, proj_bias=True,
    #           attn_drop=0.0, proj_drop=0.0, qk_scale=None)
    B, N, dim, num_heads = 2, 8, 32, 4
    hd = dim // num_heads
    scale = hd ** (-0.5)

    key = jax.random.PRNGKey(0)
    k1, k2, k3, k4, k5, k6 = jax.random.split(key, 6)
    x = jax.random.normal(k1, (B, N, dim), dtype=jnp.float32)
    w_qkv = jax.random.normal(k2, (3 * dim, dim), dtype=jnp.float32) * 0.05
    b_qkv = jax.random.normal(k3, (3 * dim,), dtype=jnp.float32) * 0.05
    w_proj = jax.random.normal(k4, (dim, dim), dtype=jnp.float32) * 0.05
    b_proj = jax.random.normal(k5, (dim,), dtype=jnp.float32) * 0.05
    params = (w_qkv, b_qkv, w_proj, b_proj)

    # Weight glue done once (hoisted out of the per-call hot path).
    prepped = prepare_attention_params(params, num_heads, scale)

    # Small shape (matches the module example); single grid block.
    out = jax.block_until_ready(attention_forward(x, prepped))
    ref = reference(x, params, num_heads, scale)
    assert out.shape == (B, N, dim)
    err = float(jnp.max(jnp.abs(out - ref)))
    assert jnp.allclose(out, ref, atol=1e-4, rtol=1e-4), f"f32 max abs err {err}"

    # Larger shape: exercises padded, multi-block "parallel" grid.
    xb = jax.random.normal(k6, (4, 512, dim), dtype=jnp.float32)
    outb = jax.block_until_ready(attention_forward(xb, prepped))
    refb = reference(xb, params, num_heads, scale)
    errb = float(jnp.max(jnp.abs(outb - refb)))
    assert jnp.allclose(outb, refb, atol=1e-4, rtol=1e-4), \
        f"f32(big) max abs err {errb}"

    # All-bf16 MXU-operand path (v6e/v7x); softmax & accumulations stay f32.
    prepped_bf16 = prepare_attention_params(params, num_heads, scale,
                                            compute_dtype=jnp.bfloat16)
    out_bf = jax.block_until_ready(attention_forward(x, prepped_bf16))
    err_bf = float(jnp.max(jnp.abs(out_bf - ref)))
    assert jnp.allclose(out_bf, ref, atol=3e-2, rtol=3e-2), \
        f"bf16 max abs err {err_bf}"

    outb_bf = jax.block_until_ready(attention_forward(xb, prepped_bf16))
    errb_bf = float(jnp.max(jnp.abs(outb_bf - refb)))
    assert jnp.allclose(outb_bf, refb, atol=3e-2, rtol=3e-2), \
        f"bf16(big) max abs err {errb_bf}"

    print("KERNEL_OK")
</pallas_src>

<mosaic_0001>
module attributes {stable_mosaic.version = 11 : i64} {
  func.func @_attention_kernel(%arg0: i32, %arg1: memref<8x128xf32, #tpu.memory_space<vmem>>, %arg2: memref<128x1536xf32, #tpu.memory_space<vmem>>, %arg3: memref<1x1536xf32, #tpu.memory_space<vmem>>, %arg4: memref<512x64xf32, #tpu.memory_space<vmem>>, %arg5: memref<64x512xf32, #tpu.memory_space<vmem>>, %arg6: memref<512x128xf32, #tpu.memory_space<vmem>>, %arg7: memref<128x128xf32, #tpu.memory_space<vmem>>, %arg8: memref<1x128xf32, #tpu.memory_space<vmem>>, %arg9: memref<8x128xf32, #tpu.memory_space<vmem>>) attributes {dimension_semantics = [#tpu.dimension_semantics<parallel>], iteration_bounds = array<i64: 1>, scalar_prefetch = 0 : i64, scratch_operands = 0 : i64, tpu.core_type = #tpu.core_type<tc>, window_params = [{transform_indices = @transform_0, window_bounds = array<i64: 8, 128>}, {pipeline_mode = #tpu.pipeline_mode<synchronous>, transform_indices = @transform_1, window_bounds = array<i64: 128, 1536>}, {pipeline_mode = #tpu.pipeline_mode<synchronous>, transform_indices = @transform_2, window_bounds = array<i64: 1, 1536>}, {pipeline_mode = #tpu.pipeline_mode<synchronous>, transform_indices = @transform_3, window_bounds = array<i64: 512, 64>}, {pipeline_mode = #tpu.pipeline_mode<synchronous>, transform_indices = @transform_4, window_bounds = array<i64: 64, 512>}, {pipeline_mode = #tpu.pipeline_mode<synchronous>, transform_indices = @transform_5, window_bounds = array<i64: 512, 128>}, {pipeline_mode = #tpu.pipeline_mode<synchronous>, transform_indices = @transform_6, window_bounds = array<i64: 128, 128>}, {pipeline_mode = #tpu.pipeline_mode<synchronous>, transform_indices = @transform_7, window_bounds = array<i64: 1, 128>}, {transform_indices = @transform_8, window_bounds = array<i64: 8, 128>}]} {
    %c0 = arith.constant 0 : index
    %c0_0 = arith.constant 0 : index
    %0 = vector.load %arg1[%c0, %c0_0] : memref<8x128xf32, #tpu.memory_space<vmem>>, vector<8x128xf32>
    %c0_1 = arith.constant 0 : index
    %c0_2 = arith.constant 0 : index
    %1 = vector.load %arg2[%c0_1, %c0_2] : memref<128x1536xf32, #tpu.memory_space<vmem>>, vector<128x1536xf32>
    %cst = arith.constant dense<0.000000e+00> : vector<8x1536xf32>
    %2 = tpu.matmul %0, %1, %cst {dimension_numbers = #tpu.dot_dimension_numbers<[1], [0], [0], [1], [0, 0, 1, 1], [], []>} : vector<8x128xf32>, vector<128x1536xf32>, vector<8x1536xf32> -> vector<8x1536xf32>
    %c0_3 = arith.constant 0 : index
    %c0_4 = arith.constant 0 : index
    %3 = vector.load %arg3[%c0_3, %c0_4] : memref<1x1536xf32, #tpu.memory_space<vmem>>, vector<1x1536xf32>
    %4 = vector.broadcast %3 : vector<1x1536xf32> to vector<8x1536xf32>
    %5 = arith.addf %2, %4 : vector<8x1536xf32>
    %6 = vector.extract_strided_slice %5 {offsets = [0, 0], sizes = [8, 512], strides = [1, 1]} : vector<8x1536xf32> to vector<8x512xf32>
    %7 = vector.extract_strided_slice %5 {offsets = [0, 512], sizes = [8, 512], strides = [1, 1]} : vector<8x1536xf32> to vector<8x512xf32>
    %8 = vector.extract_strided_slice %5 {offsets = [0, 1024], sizes = [8, 512], strides = [1, 1]} : vector<8x1536xf32> to vector<8x512xf32>
    %9 = arith.mulf %6, %7 : vector<8x512xf32>
    %c0_5 = arith.constant 0 : index
    %c0_6 = arith.constant 0 : index
    %10 = vector.load %arg4[%c0_5, %c0_6] : memref<512x64xf32, #tpu.memory_space<vmem>>, vector<512x64xf32>
    %cst_7 = arith.constant dense<0.000000e+00> : vector<8x64xf32>
    %11 = tpu.matmul %9, %10, %cst_7 {dimension_numbers = #tpu.dot_dimension_numbers<[1], [0], [0], [1], [0, 0, 1, 1], [], []>} : vector<8x512xf32>, vector<512x64xf32>, vector<8x64xf32> -> vector<8x64xf32>
    %12 = vector.extract_strided_slice %11 {offsets = [0, 0], sizes = [8, 16], strides = [1, 1]} : vector<8x64xf32> to vector<8x16xf32>
    %13 = vector.extract_strided_slice %11 {offsets = [0, 16], sizes = [8, 16], strides = [1, 1]} : vector<8x64xf32> to vector<8x16xf32>
    %14 = arith.maximumf %12, %13 : vector<8x16xf32>
    %15 = vector.extract_strided_slice %11 {offsets = [0, 32], sizes = [8, 16], strides = [1, 1]} : vector<8x64xf32> to vector<8x16xf32>
    %16 = arith.maximumf %14, %15 : vector<8x16xf32>
    %17 = vector.extract_strided_slice %11 {offsets = [0, 48], sizes = [8, 16], strides = [1, 1]} : vector<8x64xf32> to vector<8x16xf32>
    %18 = arith.maximumf %16, %17 : vector<8x16xf32>
    %19 = tpu.concatenate %18, %18, %18, %18 in 1 : vector<8x16xf32>, vector<8x16xf32>, vector<8x16xf32>, vector<8x16xf32> -> vector<8x64xf32>
    %20 = arith.subf %11, %19 : vector<8x64xf32>
    %21 = math.exp %20 : vector<8x64xf32>
    %22 = vector.extract_strided_slice %21 {offsets = [0, 0], sizes = [8, 16], strides = [1, 1]} : vector<8x64xf32> to vector<8x16xf32>
    %23 = vector.extract_strided_slice %21 {offsets = [0, 16], sizes = [8, 16], strides = [1, 1]} : vector<8x64xf32> to vector<8x16xf32>
    %24 = arith.addf %22, %23 : vector<8x16xf32>
    %25 = vector.extract_strided_slice %21 {offsets = [0, 32], sizes = [8, 16], strides = [1, 1]} : vector<8x64xf32> to vector<8x16xf32>
    %26 = arith.addf %24, %25 : vector<8x16xf32>
    %27 = vector.extract_strided_slice %21 {offsets = [0, 48], sizes = [8, 16], strides = [1, 1]} : vector<8x64xf32> to vector<8x16xf32>
    %28 = arith.addf %26, %27 : vector<8x16xf32>
    %cst_8 = arith.constant 1.000000e+00 : f32
    %29 = vector.broadcast %cst_8 : f32 to vector<8x16xf32>
    %30 = arith.divf %29, %28 : vector<8x16xf32>
    %31 = tpu.concatenate %30, %30, %30, %30 in 1 : vector<8x16xf32>, vector<8x16xf32>, vector<8x16xf32>, vector<8x16xf32> -> vector<8x64xf32>
    %32 = arith.mulf %21, %31 : vector<8x64xf32>
    %c0_9 = arith.constant 0 : index
    %c0_10 = arith.constant 0 : index
    %33 = vector.load %arg5[%c0_9, %c0_10] : memref<64x512xf32, #tpu.memory_space<vmem>>, vector<64x512xf32>
    %cst_11 = arith.constant dense<0.000000e+00> : vector<8x512xf32>
    %34 = tpu.matmul %32, %33, %cst_11 {dimension_numbers = #tpu.dot_dimension_numbers<[1], [0], [0], [1], [0, 0, 1, 1], [], []>} : vector<8x64xf32>, vector<64x512xf32>, vector<8x512xf32> -> vector<8x512xf32>
    %35 = arith.mulf %34, %8 : vector<8x512xf32>
    %c0_12 = arith.constant 0 : index
    %c0_13 = arith.constant 0 : index
    %36 = vector.load %arg6[%c0_12, %c0_13] : memref<512x128xf32, #tpu.memory_space<vmem>>, vector<512x128xf32>
    %cst_14 = arith.constant dense<0.000000e+00> : vector<8x128xf32>
    %37 = tpu.matmul %35, %36, %cst_14 {dimension_numbers = #tpu.dot_dimension_numbers<[1], [0], [0], [1], [0, 0, 1, 1], [], []>} : vector<8x512xf32>, vector<512x128xf32>, vector<8x128xf32> -> vector<8x128xf32>
    %c0_15 = arith.constant 0 : index
    %c0_16 = arith.constant 0 : index
    %38 = vector.load %arg7[%c0_15, %c0_16] : memref<128x128xf32, #tpu.memory_space<vmem>>, vector<128x128xf32>
    %cst_17 = arith.constant dense<0.000000e+00> : vector<8x128xf32>
    %39 = tpu.matmul %37, %38, %cst_17 {dimension_numbers = #tpu.dot_dimension_numbers<[1], [0], [0], [1], [0, 0, 1, 1], [], []>} : vector<8x128xf32>, vector<128x128xf32>, vector<8x128xf32> -> vector<8x128xf32>
    %c0_18 = arith.constant 0 : index
    %c0_19 = arith.constant 0 : index
    %40 = vector.load %arg8[%c0_18, %c0_19] : memref<1x128xf32, #tpu.memory_space<vmem>>, vector<1x128xf32>
    %41 = vector.broadcast %40 : vector<1x128xf32> to vector<8x128xf32>
    %42 = arith.addf %39, %41 : vector<8x128xf32>
    %c0_20 = arith.constant 0 : index
    %c0_21 = arith.constant 0 : index
    %43 = vector.load %arg9[%c0_20, %c0_21] : memref<8x128xf32, #tpu.memory_space<vmem>>, vector<8x128xf32>
    tpu.vector_store %arg9[%c0_20, %c0_21], %42 {strides = array<i32>} : memref<8x128xf32, #tpu.memory_space<vmem>>, vector<8x128xf32>,
    return
  }
  func.func @transform_0(%arg0: i32) -> (i32, i32) {
    %c0_i32 = arith.constant 0 : i32
    %c0_i32_0 = arith.constant 0 : i32
    return %arg0, %c0_i32 : i32, i32
  }
  func.func @transform_1(%arg0: i32) -> (i32, i32) {
    %c0_i32 = arith.constant 0 : i32
    %c0_i32_0 = arith.constant 0 : i32
    %c0_i32_1 = arith.constant 0 : i32
    return %c0_i32, %c0_i32_0 : i32, i32
  }
  func.func @transform_2(%arg0: i32) -> (i32, i32) {
    %c0_i32 = arith.constant 0 : i32
    %c0_i32_0 = arith.constant 0 : i32
    %c0_i32_1 = arith.constant 0 : i32
    return %c0_i32, %c0_i32_0 : i32, i32
  }
  func.func @transform_3(%arg0: i32) -> (i32, i32) {
    %c0_i32 = arith.constant 0 : i32
    %c0_i32_0 = arith.constant 0 : i32
    %c0_i32_1 = arith.constant 0 : i32
    return %c0_i32, %c0_i32_0 : i32, i32
  }
  func.func @transform_4(%arg0: i32) -> (i32, i32) {
    %c0_i32 = arith.constant 0 : i32
    %c0_i32_0 = arith.constant 0 : i32
    %c0_i32_1 = arith.constant 0 : i32
    return %c0_i32, %c0_i32_0 : i32, i32
  }
  func.func @transform_5(%arg0: i32) -> (i32, i32) {
    %c0_i32 = arith.constant 0 : i32
    %c0_i32_0 = arith.constant 0 : i32
    %c0_i32_1 = arith.constant 0 : i32
    return %c0_i32, %c0_i32_0 : i32, i32
  }
  func.func @transform_6(%arg0: i32) -> (i32, i32) {
    %c0_i32 = arith.constant 0 : i32
    %c0_i32_0 = arith.constant 0 : i32
    %c0_i32_1 = arith.constant 0 : i32
    return %c0_i32, %c0_i32_0 : i32, i32
  }
  func.func @transform_7(%arg0: i32) -> (i32, i32) {
    %c0_i32 = arith.constant 0 : i32
    %c0_i32_0 = arith.constant 0 : i32
    %c0_i32_1 = arith.constant 0 : i32
    return %c0_i32, %c0_i32_0 : i32, i32
  }
  func.func @transform_8(%arg0: i32) -> (i32, i32) {
    %c0_i32 = arith.constant 0 : i32
    %c0_i32_0 = arith.constant 0 : i32
    return %arg0, %c0_i32 : i32, i32
  }
}

</mosaic_0001>

<bundles_post_ra>
// kernel: tpu_custom_call.1
= control target key start
LH: loop header
LB: loop body
LE: loop exit
PB: predicated region body
PF: predicated region fallthrough
CT: control target
= control target key end

     0   :  { %13 = vsyncpa [#allocation3], 0  ;;  %s2670_s0 = inlined_call_operand.hbm [shape: f32[8,128], index: 0, kind: input, shape index: {}]   ;;  %s2671_s1 = inlined_call_operand.hbm [shape: f32[128,1536], index: 1, kind: input, shape index: {}]   ;;  %s2672_s2 = inlined_call_operand.hbm [shape: f32[1,1536], index: 2, kind: input, shape index: {}]   ;;  %s2673_s3 = inlined_call_operand.hbm [shape: f32[512,64], index: 3, kind: input, shape index: {}]   ;;  %s2674_s4 = inlined_call_operand.hbm [shape: f32[64,512], index: 4, kind: input, shape index: {}]   ;;  %s2675_s5 = inlined_call_operand.hbm [shape: f32[512,128], index: 5, kind: input, shape index: {}]   ;;  %s2676_s6 = inlined_call_operand.hbm [shape: f32[128,128], index: 6, kind: input, shape index: {}]   ;;  %s2677_s7 = inlined_call_operand.hbm [shape: f32[1,128], index: 7, kind: input, shape index: {}]   ;;  %s2678_s8 = inlined_call_operand.hbm [shape: f32[8,128], index: 8, kind: output, shape index: {}]  }
   0x1   :  { %14 = vsyncpa [#allocation6], 0 }
   0x2   :  { %15 = vsyncpa [#allocation9], 0 }
   0x3   :  { %16 = vsyncpa [#allocation12], 0 }
   0x4   :  { %17 = vsyncpa [#allocation15], 0 }
   0x5   :  { %18 = vsyncpa [#allocation4], 0  ;;  %s2391_s27 = smov [#allocation5]   ;;  %s2181_s9 = scalar_lea.hbm %s2671_s1, 24576 }
   0x6   :  { %s34_s28 = sshll.u32 %s2391_s27, 4  ;;  %p2182_p0 = scmp.ne.s32.totalorder %s2671_s1, %s2181_s9  ;;  %s35_s28 = int_to_ptr.vmem [resolvable:$true] %s34_s28 }
   0x7   :  { %p2185_p1 = scmp.lt.u32.totalorder %s2181_s9, %s2671_s1 }
   0x9   :  { %p2187_p2 = pnand %p2185_p1, %p2182_p0 }
   0xb   :  { %2190 = shalt.err (!%p2187_p2)
}
   0xc   :  { %s2191_s14 = scalar_lea.vmem %s35_s28, 24576  ;;  %p2196_p4 = scmp.lt.s32.totalorder %s35_s28, %s35_s28 }
   0xd   :  { %p2192_p3 = scmp.ne.s32.totalorder %s35_s28, %s2191_s14  ;;  %p2197_p5 = scmp.lt.s32.totalorder %s2191_s14, %s2191_s14 }
   0xf   :  { %p2198_p6 = por %p2197_p5, %p2196_p4 }
  0x11   :  { %p2199_p7 = pnand %p2198_p6, %p2192_p3 }
  0x13   :  { %2202 = shalt.err (!%p2199_p7)
}
  0x14   :  { %s2392_s15 = smov 1536   ;;  %s2393_s16 = smov 96  }
  0x15   :  { %40 = dma.hbm_to_vmem [thread:$0]  %s2671_s1, 24576, %s35_s28, [#allocation6], %s2392_s15, %s2392_s15, %s2393_s16  }
  0x16   :  { %s2394_s19 = smov [#allocation8]   ;;  %s2203_s23 = scalar_lea.hbm %s2673_s3, 8192 }
  0x17   :  { %s56_s20 = sshll.u32 %s2394_s19, 4  ;;  %p2204_p8 = scmp.ne.s32.totalorder %s2673_s3, %s2203_s23  ;;  %s57_s20 = int_to_ptr.vmem [resolvable:$true] %s56_s20 }
  0x18   :  { %p2207_p9 = scmp.lt.u32.totalorder %s2203_s23, %s2673_s3 }
  0x1a   :  { %p2209_p10 = pnand %p2207_p9, %p2204_p8 }
  0x1c   :  { %2212 = shalt.err (!%p2209_p10)
}
  0x1d   :  { %s2213_s29 = scalar_lea.vmem %s57_s20, 8192  ;;  %p2218_p12 = scmp.lt.s32.totalorder %s57_s20, %s57_s20 }
  0x1e   :  { %p2214_p11 = scmp.ne.s32.totalorder %s57_s20, %s2213_s29  ;;  %p2219_p13 = scmp.lt.s32.totalorder %s2213_s29, %s2213_s29 }
  0x20   :  { %p2220_p0 = por %p2219_p13, %p2218_p12 }
  0x22   :  { %p2221_p1 = pnand %p2220_p0, %p2214_p11 }
  0x24   :  { %2224 = shalt.err (!%p2221_p1)
}
  0x25   :  { %s2395_s1 = smov 128   ;;  %s2396_s28 = smov 8  }
  0x26   :  { %62 = dma.hbm_to_vmem [thread:$0]  %s2673_s3, 8192, %s57_s20, [#allocation9], %s2395_s1, %s2395_s1, %s2396_s28  }
  0x27   :  { %s2397_s10 = smov [#allocation11]   ;;  %s2398_s12 = smov [#allocation2]  }
  0x28   :  { %s80_s11 = sshll.u32 %s2397_s10, 4  ;;  %s25_s13 = sshll.u32 %s2398_s12, 4  ;;  %s81_s11 = int_to_ptr.vmem [resolvable:$true] %s80_s11  ;;  %s26_s13 = int_to_ptr.vmem [resolvable:$true] %s25_s13 }
  0x29   :  { %s2225_s17 = scalar_lea.hbm %s2675_s5, 8192 }
  0x2a   :  { %p2226_p2 = scmp.ne.s32.totalorder %s2675_s5, %s2225_s17  ;;  %p2229_p3 = scmp.lt.u32.totalorder %s2225_s17, %s2675_s5 }
  0x2c   :  { %p2231_p4 = pnand %p2229_p3, %p2226_p2 }
  0x2e   :  { %2234 = shalt.err (!%p2231_p4)
}
  0x2f   :  { %s2235_s3 = scalar_lea.vmem %s81_s11, 8192  ;;  %p2240_p6 = scmp.lt.s32.totalorder %s81_s11, %s81_s11 }
  0x30   :  { %p2236_p5 = scmp.ne.s32.totalorder %s81_s11, %s2235_s3  ;;  %p2241_p7 = scmp.lt.s32.totalorder %s2235_s3, %s2235_s3 }
  0x32   :  { %p2242_p8 = por %p2241_p7, %p2240_p6 }
  0x34   :  { %p2243_p9 = pnand %p2242_p8, %p2236_p5 }
  0x36   :  { %2246 = shalt.err (!%p2243_p9)
}
  0x37   :  { %86 = dma.hbm_to_vmem [thread:$0]  %s2675_s5, 8192, %s81_s11, [#allocation12], %s2395_s1, %s2395_s1, %s2396_s28  }
  0x38   :  { %s2247_s26 = scalar_lea.hbm %s2670_s0, 128 }
  0x39   :  { %p2248_p10 = scmp.ne.s32.totalorder %s2670_s0, %s2247_s26  ;;  %p2251_p11 = scmp.lt.u32.totalorder %s2247_s26, %s2670_s0 }
  0x3b   :  { %p2253_p12 = pnand %p2251_p11, %p2248_p10 }
  0x3d   :  { %2256 = shalt.err (!%p2253_p12)
}
  0x3e   :  { %s2257_s10 = scalar_lea.vmem %s26_s13, 128  ;;  %p2262_p0 = scmp.lt.s32.totalorder %s26_s13, %s26_s13 }
  0x3f   :  { %p2258_p13 = scmp.ne.s32.totalorder %s26_s13, %s2257_s10  ;;  %p2263_p1 = scmp.lt.s32.totalorder %s2257_s10, %s2257_s10 }
  0x41   :  { %p2264_p2 = por %p2263_p1, %p2262_p0 }
  0x43   :  { %p2265_p3 = pnand %p2264_p2, %p2258_p13 }
  0x45   :  { %2268 = shalt.err (!%p2265_p3)
}
  0x46   :  { %28 = dma.hbm_to_vmem [thread:$0]  %s2670_s0, 128, %s26_s13, [#allocation3]  }
  0x47   :  { %s2399_s12 = smov [#allocation7]   ;;  %s2400_s15 = smov [#allocation10]  }
  0x48   :  { %s47_s14 = sshll.u32 %s2399_s12, 4  ;;  %s68_s17 = sshll.u32 %s2400_s15, 4  ;;  %s48_s14 = int_to_ptr.vmem [resolvable:$true] %s47_s14  ;;  %s2513_s17 = int_to_ptr.vmem [resolvable:$true] %s68_s17 }
  0x49   :  { %s2269_s21 = scalar_lea.hbm %s2672_s2, 192 }
  0x4a   :  { %p2270_p4 = scmp.ne.s32.totalorder %s2672_s2, %s2269_s21  ;;  %p2273_p5 = scmp.lt.u32.totalorder %s2269_s21, %s2672_s2 }
  0x4c   :  { %p2275_p6 = pnand %p2273_p5, %p2270_p4 }
  0x4e   :  { %2278 = shalt.err (!%p2275_p6)
}
  0x4f   :  { %s2279_s0 = scalar_lea.vmem %s48_s14, 192  ;;  %p2284_p8 = scmp.lt.s32.totalorder %s48_s14, %s48_s14 }
  0x50   :  { %p2280_p7 = scmp.ne.s32.totalorder %s48_s14, %s2279_s0  ;;  %p2285_p9 = scmp.lt.s32.totalorder %s2279_s0, %s2279_s0 }
  0x52   :  { %p2286_p10 = por %p2285_p9, %p2284_p8 }
  0x54   :  { %p2287_p11 = pnand %p2286_p10, %p2280_p7 }
  0x56   :  { %2290 = shalt.err (!%p2287_p11)
}
  0x57   :  { %50 = dma.hbm_to_vmem [thread:$0]  %s2672_s2, 192, %s48_s14, [#allocation6]  }
  0x58   :  { %s2291_s27 = scalar_lea.hbm %s2674_s4, 4096 }
  0x59   :  { %p2292_p12 = scmp.ne.s32.totalorder %s2674_s4, %s2291_s27  ;;  %p2295_p13 = scmp.lt.u32.totalorder %s2291_s27, %s2674_s4 }
  0x5b   :  { %p2297_p0 = pnand %p2295_p13, %p2292_p12 }
  0x5d   :  { %2300 = shalt.err (!%p2297_p0)
}
  0x5e   :  { %s2301_s5 = scalar_lea.vmem %s2513_s17, 4096  ;;  %p2306_p2 = scmp.lt.s32.totalorder %s2513_s17, %s2513_s17 }
  0x5f   :  { %p2302_p1 = scmp.ne.s32.totalorder %s2513_s17, %s2301_s5  ;;  %p2307_p3 = scmp.lt.s32.totalorder %s2301_s5, %s2301_s5 }
  0x61   :  { %p2308_p4 = por %p2307_p3, %p2306_p2 }
  0x63   :  { %p2309_p5 = pnand %p2308_p4, %p2302_p1 }
  0x65   :  { %2312 = shalt.err (!%p2309_p5)
}
  0x66   :  { %s2401_s2 = smov 512   ;;  %s2402_s11 = smov 32  }
  0x67   :  { %74 = dma.hbm_to_vmem [thread:$0]  %s2674_s4, 4096, %s2513_s17, [#allocation9], %s2401_s2, %s2401_s2, %s2402_s11  }
  0x68   :  { %s2403_s15 = smov [#allocation13]   ;;  %s2404_s19 = smov [#allocation14]  }
  0x69   :  { %s92_s18 = sshll.u32 %s2403_s15, 4  ;;  %s105_s21 = sshll.u32 %s2404_s19, 4  ;;  %s93_s18 = int_to_ptr.vmem [resolvable:$true] %s92_s18  ;;  %s106_s21 = int_to_ptr.vmem [resolvable:$true] %s105_s21 }
  0x6a   :  { %s2313_s20 = scalar_lea.hbm %s2676_s6, 2048 }
  0x6b   :  { %p2314_p6 = scmp.ne.s32.totalorder %s2676_s6, %s2313_s20  ;;  %p2317_p7 = scmp.lt.u32.totalorder %s2313_s20, %s2676_s6 }
  0x6d   :  { %p2319_p8 = pnand %p2317_p7, %p2314_p6 }
  0x6f   :  { %2322 = shalt.err (!%p2319_p8)
}
  0x70   :  { %s2323_s4 = scalar_lea.vmem %s93_s18, 2048  ;;  %p2328_p10 = scmp.lt.s32.totalorder %s93_s18, %s93_s18 }
  0x71   :  { %p2324_p9 = scmp.ne.s32.totalorder %s93_s18, %s2323_s4  ;;  %p2329_p11 = scmp.lt.s32.totalorder %s2323_s4, %s2323_s4 }
  0x73   :  { %p2330_p12 = por %p2329_p11, %p2328_p10 }
  0x75   :  { %p2331_p13 = pnand %p2330_p12, %p2324_p9 }
  0x77   :  { %2334 = shalt.err (!%p2331_p13)
}
  0x78   :  { %98 = dma.hbm_to_vmem [thread:$0]  %s2676_s6, 2048, %s93_s18, [#allocation12], %s2395_s1, %s2395_s1, %s2396_s28  }
  0x79   :  { %s2335_s29 = scalar_lea.hbm %s2677_s7, 16 }
  0x7a   :  { %p2336_p0 = scmp.ne.s32.totalorder %s2677_s7, %s2335_s29  ;;  %p2339_p1 = scmp.lt.u32.totalorder %s2335_s29, %s2677_s7 }
  0x7c   :  { %p2341_p2 = pnand %p2339_p1, %p2336_p0 }
  0x7e   :  { %2344 = shalt.err (!%p2341_p2)
}
  0x7f   :  { %s2345_s2 = scalar_lea.vmem %s106_s21, 16  ;;  %s2349_s12 = scalar_lea.vmem %s106_s21, 32 }
  0x80   :  { %p2346_p3 = scmp.ne.s32.totalorder %s106_s21, %s2345_s2  ;;  %p2350_p4 = scmp.lt.s32.totalorder %s106_s21, %s106_s21 }
  0x81   :  { %p2351_p5 = scmp.lt.s32.totalorder %s2349_s12, %s2345_s2 }
  0x83   :  { %p2352_p6 = por %p2351_p5, %p2350_p4 }
  0x85   :  { %p2353_p7 = pnand %p2352_p6, %p2346_p3 }
  0x87   :  { %2356 = shalt.err (!%p2353_p7)
}
  0x88   :  { %108 = dma.hbm_to_vmem [thread:$0]  %s2677_s7, 16, %s106_s21, [#allocation15]  }
  0x89   :  { %2379 = dma.done.wait [#allocation3], 128  }
  0x8a   :  { %2380 = vsyncadd [#allocation3], 4294967168 }
  0x8b   :  { %2381 = dma.done.wait [#allocation6], 24768  }
  0x8c   :  { %2382 = vsyncadd [#allocation6], 4294942528 }
  0x8d   :  { %2383 = dma.done.wait [#allocation9], 12288  }
  0x8e   :  { %2384 = vsyncadd [#allocation9], 4294955008 }
  0x8f   :  { %2385 = dma.done.wait [#allocation12], 10240  }
  0x90   :  { %2386 = vsyncadd [#allocation12], 4294957056 }
  0x91   :  { %2387 = dma.done.wait [#allocation15], 16  }
  0x92   :  { %2388 = vsyncadd [#allocation15], 4294967280  ;;  %v2405_v0 = vmov 0.0   ;;  %v135_v1 = vld [vmem:[#allocation5 + $0x8] sm:$0xff]  ;;  %v137_v3 = vld [vmem:[#allocation5 + $0x18] sm:$0xff]  ;;  %s2406_s7 = smov 80  }
  0x93   :  { %454 = vmatprep.mubr.f32.mxu0 %v2405_v0  ;;  %525 = vmatprep.mubr.f32.mxu1 %v2405_v0  ;;  %v147_v2 = vld [vmem:[#allocation5 + $0x68] sm:$0xff]  ;;  %v149_v5 = vld [vmem:[#allocation5 + $0x78] sm:$0xff]  ;;  %v134_v6 = vld [vmem:[#allocation5] sm:$0xff]  ;;  %s2407_s28 = smov 112   ;;  %s2408_s14 = smov 16   ;;  %vm1047_vm0 = vcmask 130048  }
  0x94   :  { %v1779_v4 = vpack.c.bf16 %v147_v2, %v135_v1  ;;  %v146_v7 = vld [vmem:[#allocation5 + $0x60] sm:$0xff]  ;;  %v1811_v8 = vpack.c.bf16 %v149_v5, %v137_v3  ;;  %v136_v10 = vld [vmem:[#allocation5 + $0x10] sm:$0xff]  ;;  %v159_v12 = vld [vmem:[#allocation5 + $0xc8] sm:$0xff]  ;;  %s2409_s15 = smov 48   ;;  %vm1049_vm1 = vcmask 261120   ;;  %vm1051_vm2 = vcmask 392192  }
  0x95   :  { %v1781_v9 = vpack.c.bf16 %v146_v7, %v134_v6  ;;  %v148_v11 = vld [vmem:[#allocation5 + $0x70] sm:$0xff]  ;;  %v171_v14 = vld [vmem:[#allocation5 + $0x128] sm:$0xff]  ;;  %v161_v15 = vld [vmem:[#allocation5 + $0xd8] sm:$0xff]  ;;  %vm1117_vm3 = vcmask 523264   ;;  %vm2411_vm4 = vmmov 0  }
  0x96   :  { %1780 = vmatprep.subr.bf16.mxu0 %v1779_v4  ;;  %v1813_v13 = vpack.c.bf16 %v148_v11, %v136_v10  ;;  %v173_v16 = vld [vmem:[#allocation5 + $0x138] sm:$0xff]  ;;  %1812 = vmatprep.subr.bf16.mxu1 %v1811_v8  ;;  %v1783_v17 = vpack.c.bf16 %v171_v14, %v159_v12  ;;  %v158_v19 = vld [vmem:[#allocation5 + $0xc0] sm:$0xff]  ;;  %v160_v21 = vld [vmem:[#allocation5 + $0xd0] sm:$0xff] }
  0x97   :  { %1782 = vmatpush1.bf16.msra.mxu0 %v1781_v9  ;;  %v1815_v18 = vpack.c.bf16 %v173_v16, %v161_v15  ;;  %v170_v20 = vld [vmem:[#allocation5 + $0x120] sm:$0xff]  ;;  %v172_v23 = vld [vmem:[#allocation5 + $0x130] sm:$0xff]  ;;  %v183_v24 = vld [vmem:[#allocation5 + $0x188] sm:$0xff] }
  0x98   :  { %1814 = vmatpush1.bf16.msra.mxu1 %v1813_v13  ;;  %v1785_v22 = vpack.c.bf16 %v170_v20, %v158_v19  ;;  %v195_v25 = vld [vmem:[#allocation5 + $0x1e8] sm:$0xff]  ;;  %1784 = vmatprep.subr.bf16.mxu0 %v1783_v17  ;;  %v1817_v26 = vpack.c.bf16 %v172_v23, %v160_v21  ;;  %v185_v28 = vld [vmem:[#allocation5 + $0x198] sm:$0xff]  ;;  %v182_v30 = vld [vmem:[#allocation5 + $0x180] sm:$0xff] }
  0x99   :  { %1816 = vmatprep.subr.bf16.mxu1 %v1815_v18  ;;  %v1787_v27 = vpack.c.bf16 %v195_v25, %v183_v24  ;;  %v197_v29 = vld [vmem:[#allocation5 + $0x1f8] sm:$0xff]  ;;  %v194_v32 = vld [vmem:[#allocation5 + $0x1e0] sm:$0xff]  ;;  %v184_v33 = vld [vmem:[#allocation5 + $0x190] sm:$0xff] }
  0x9a   :  { %v1819_v31 = vpack.c.bf16 %v197_v29, %v185_v28  ;;  %v196_v34 = vld [vmem:[#allocation5 + $0x1f0] sm:$0xff]  ;;  %v1789_v35 = vpack.c.bf16 %v194_v32, %v182_v30  ;;  %v207_v36 = vld [vmem:[#allocation5 + $0x248] sm:$0xff]  ;;  %v209_v38 = vld [vmem:[#allocation5 + $0x258] sm:$0xff] }
  0x9b   :  { %1786 = vmatpush1.bf16.msra.mxu0 %v1785_v22  ;;  %v219_v37 = vld [vmem:[#allocation5 + $0x2a8] sm:$0xff]  ;;  %v1821_v39 = vpack.c.bf16 %v196_v34, %v184_v33  ;;  %v221_v41 = vld [vmem:[#allocation5 + $0x2b8] sm:$0xff]  ;;  %v206_v42 = vld [vmem:[#allocation5 + $0x240] sm:$0xff] }
  0x9c   :  { %1818 = vmatpush1.bf16.msra.mxu1 %v1817_v26  ;;  %1788 = vmatprep.subr.bf16.mxu0 %v1787_v27  ;;  %v1791_v40 = vpack.c.bf16 %v219_v37, %v207_v36  ;;  %v218_v43 = vld [vmem:[#allocation5 + $0x2a0] sm:$0xff]  ;;  %v1823_v44 = vpack.c.bf16 %v221_v41, %v209_v38  ;;  %v208_v45 = vld [vmem:[#allocation5 + $0x250] sm:$0xff]  ;;  %v231_v47 = vld [vmem:[#allocation5 + $0x308] sm:$0xff] }
  0x9d   :  { %1820 = vmatprep.subr.bf16.mxu1 %v1819_v31  ;;  %v220_v46 = vld [vmem:[#allocation5 + $0x2b0] sm:$0xff]  ;;  %v243_v48 = vld [vmem:[#allocation5 + $0x368] sm:$0xff]  ;;  %v233_v49 = vld [vmem:[#allocation5 + $0x318] sm:$0xff]  ;;  %v1793_v51 = vpack.c.bf16 %v218_v43, %v206_v42 }
  0x9e   :  { %v245_v50 = vld [vmem:[#allocation5 + $0x378] sm:$0xff]  ;;  %v1825_v52 = vpack.c.bf16 %v220_v46, %v208_v45  ;;  %v1795_v53 = vpack.c.bf16 %v243_v48, %v231_v47  ;;  %v230_v54 = vld [vmem:[#allocation5 + $0x300] sm:$0xff]  ;;  %v232_v56 = vld [vmem:[#allocation5 + $0x310] sm:$0xff] }
  0x9f   :  { %1790 = vmatpush1.bf16.msra.mxu0 %v1789_v35  ;;  %v242_v55 = vld [vmem:[#allocation5 + $0x360] sm:$0xff]  ;;  %v1827_v57 = vpack.c.bf16 %v245_v50, %v233_v49  ;;  %v244_v58 = vld [vmem:[#allocation5 + $0x370] sm:$0xff]  ;;  %v255_v59 = vld [vmem:[#allocation5 + $0x3c8] sm:$0xff] }
  0xa0   :  { %1822 = vmatpush1.bf16.msra.mxu1 %v1821_v39  ;;  %1792 = vmatprep.subr.bf16.mxu0 %v1791_v40  ;;  %v267_v60 = vld [vmem:[#allocation5 + $0x428] sm:$0xff]  ;;  %v257_v61 = vld [vmem:[#allocation5 + $0x3d8] sm:$0xff]  ;;  %v1797_v63 = vpack.c.bf16 %v242_v55, %v230_v54  ;;  %v1829_v1 = vpack.c.bf16 %v244_v58, %v232_v56  ;;  %v254_v3 = vld [vmem:[#allocation5 + $0x3c0] sm:$0xff] }
  0xa1   :  { %1824 = vmatprep.subr.bf16.mxu1 %v1823_v44  ;;  %v269_v62 = vld [vmem:[#allocation5 + $0x438] sm:$0xff]  ;;  %v1799_v2 = vpack.c.bf16 %v267_v60, %v255_v59  ;;  %v266_v4 = vld [vmem:[#allocation5 + $0x420] sm:$0xff]  ;;  %v256_v5 = vld [vmem:[#allocation5 + $0x3d0] sm:$0xff] }
  0xa2   :  { %v1831_v6 = vpack.c.bf16 %v269_v62, %v257_v61  ;;  %v268_v7 = vld [vmem:[#allocation5 + $0x430] sm:$0xff]  ;;  %v279_v8 = vld [vmem:[#allocation5 + $0x488] sm:$0xff]  ;;  %v281_v10 = vld [vmem:[#allocation5 + $0x498] sm:$0xff]  ;;  %v1801_v12 = vpack.c.bf16 %v266_v4, %v254_v3 }
  0xa3   :  { %1794 = vmatpush1.bf16.msra.mxu0 %v1793_v51  ;;  %v291_v9 = vld [vmem:[#allocation5 + $0x4e8] sm:$0xff]  ;;  %v293_v11 = vld [vmem:[#allocation5 + $0x4f8] sm:$0xff]  ;;  %v1833_v13 = vpack.c.bf16 %v268_v7, %v256_v5  ;;  %v278_v15 = vld [vmem:[#allocation5 + $0x480] sm:$0xff] }
  0xa4   :  { %1826 = vmatpush1.bf16.msra.mxu1 %v1825_v52  ;;  %1796 = vmatprep.subr.bf16.mxu0 %v1795_v53  ;;  %v1803_v14 = vpack.c.bf16 %v291_v9, %v279_v8  ;;  %v290_v16 = vld [vmem:[#allocation5 + $0x4e0] sm:$0xff]  ;;  %v280_v17 = vld [vmem:[#allocation5 + $0x490] sm:$0xff]  ;;  %v1835_v18 = vpack.c.bf16 %v293_v11, %v281_v10  ;;  %v303_v20 = vld [vmem:[#allocation5 + $0x548] sm:$0xff] }
  0xa5   :  { %1828 = vmatprep.subr.bf16.mxu1 %v1827_v57  ;;  %v292_v19 = vld [vmem:[#allocation5 + $0x4f0] sm:$0xff]  ;;  %v315_v21 = vld [vmem:[#allocation5 + $0x5a8] sm:$0xff]  ;;  %v305_v22 = vld [vmem:[#allocation5 + $0x558] sm:$0xff]  ;;  %v1805_v24 = vpack.c.bf16 %v290_v16, %v278_v15 }
  0xa6   :  { %v317_v23 = vld [vmem:[#allocation5 + $0x5b8] sm:$0xff]  ;;  %v1837_v25 = vpack.c.bf16 %v292_v19, %v280_v17  ;;  %v1807_v26 = vpack.c.bf16 %v315_v21, %v303_v20  ;;  %v302_v27 = vld [vmem:[#allocation5 + $0x540] sm:$0xff]  ;;  %v304_v29 = vld [vmem:[#allocation5 + $0x550] sm:$0xff] }
  0xa7   :  { %1798 = vmatpush1.bf16.msra.mxu0 %v1797_v63  ;;  %v314_v28 = vld [vmem:[#allocation5 + $0x5a0] sm:$0xff]  ;;  %v1839_v30 = vpack.c.bf16 %v317_v23, %v305_v22  ;;  %v316_v31 = vld [vmem:[#allocation5 + $0x5b0] sm:$0xff]  ;;  %v139_v32 = vld [vmem:[#allocation5 + $0x28] sm:$0xff] }
  0xa8   :  { %1830 = vmatpush1.bf16.msra.mxu1 %v1829_v1  ;;  %1800 = vmatprep.subr.bf16.mxu0 %v1799_v2  ;;  %v151_v33 = vld [vmem:[#allocation5 + $0x88] sm:$0xff]  ;;  %v141_v34 = vld [vmem:[#allocation5 + $0x38] sm:$0xff]  ;;  %v1809_v36 = vpack.c.bf16 %v314_v28, %v302_v27  ;;  %v1841_v37 = vpack.c.bf16 %v316_v31, %v304_v29  ;;  %v138_v39 = vld [vmem:[#allocation5 + $0x20] sm:$0xff] }
  0xa9   :  { %1832 = vmatprep.subr.bf16.mxu1 %v1831_v6  ;;  %v153_v35 = vld [vmem:[#allocation5 + $0x98] sm:$0xff]  ;;  %v1843_v38 = vpack.c.bf16 %v151_v33, %v139_v32  ;;  %v150_v40 = vld [vmem:[#allocation5 + $0x80] sm:$0xff]  ;;  %v140_v41 = vld [vmem:[#allocation5 + $0x30] sm:$0xff] }
  0xaa   :  { %v1875_v42 = vpack.c.bf16 %v153_v35, %v141_v34  ;;  %v152_v43 = vld [vmem:[#allocation5 + $0x90] sm:$0xff]  ;;  %v163_v44 = vld [vmem:[#allocation5 + $0xe8] sm:$0xff]  ;;  %v165_v46 = vld [vmem:[#allocation5 + $0xf8] sm:$0xff]  ;;  %v1845_v49 = vpack.c.bf16 %v150_v40, %v138_v39 }
  0xab   :  { %1802 = vmatpush1.bf16.msra.mxu0 %v1801_v12  ;;  %v175_v45 = vld [vmem:[#allocation5 + $0x148] sm:$0xff]  ;;  %v177_v47 = vld [vmem:[#allocation5 + $0x158] sm:$0xff]  ;;  %v1877_v50 = vpack.c.bf16 %v152_v43, %v140_v41  ;;  %v162_v52 = vld [vmem:[#allocation5 + $0xe0] sm:$0xff] }
  0xac   :  { %1834 = vmatpush1.bf16.msra.mxu1 %v1833_v13  ;;  %1804 = vmatprep.subr.bf16.mxu0 %v1803_v14  ;;  %v2574_v48 = vld [vmem:[#allocation2] sm:$0xff]  ;;  %v1847_v51 = vpack.c.bf16 %v175_v45, %v163_v44  ;;  %v174_v53 = vld [vmem:[#allocation5 + $0x140] sm:$0xff]  ;;  %v164_v54 = vld [vmem:[#allocation5 + $0xf0] sm:$0xff]  ;;  %v1879_v55 = vpack.c.bf16 %v177_v47, %v165_v46 }
  0xad   :  { %1836 = vmatprep.subr.bf16.mxu1 %v1835_v18  ;;  %v176_v56 = vld [vmem:[#allocation5 + $0x150] sm:$0xff]  ;;  %v187_v57 = vld [vmem:[#allocation5 + $0x1a8] sm:$0xff]  ;;  %v189_v59 = vld [vmem:[#allocation5 + $0x1b8] sm:$0xff]  ;;  %v1849_v61 = vpack.c.bf16 %v174_v53, %v162_v52 }
  0xae   :  { %v199_v58 = vld [vmem:[#allocation5 + $0x208] sm:$0xff]  ;;  %v201_v60 = vld [vmem:[#allocation5 + $0x218] sm:$0xff]  ;;  %v1881_v62 = vpack.c.bf16 %v176_v56, %v164_v54  ;;  %v186_v1 = vld [vmem:[#allocation5 + $0x1a0] sm:$0xff] }
  0xaf   :  { %1806 = vmatpush1.bf16.msra.mxu0 %v1805_v24  ;;  %v1851_v63 = vpack.c.bf16 %v199_v58, %v187_v57  ;;  %v198_v2 = vld [vmem:[#allocation5 + $0x200] sm:$0xff]  ;;  %v188_v3 = vld [vmem:[#allocation5 + $0x1b0] sm:$0xff]  ;;  %v1883_v4 = vpack.c.bf16 %v201_v60, %v189_v59  ;;  %v211_v6 = vld [vmem:[#allocation5 + $0x268] sm:$0xff] }
  0xb0   :  { %1838 = vmatpush1.bf16.msra.mxu1 %v1837_v25  ;;  %1808 = vmatprep.subr.bf16.mxu0 %v1807_v26  ;;  %v200_v5 = vld [vmem:[#allocation5 + $0x210] sm:$0xff]  ;;  %v223_v7 = vld [vmem:[#allocation5 + $0x2c8] sm:$0xff]  ;;  %v213_v8 = vld [vmem:[#allocation5 + $0x278] sm:$0xff]  ;;  %v1853_v10 = vpack.c.bf16 %v198_v2, %v186_v1 }
  0xb1   :  { %1840 = vmatprep.subr.bf16.mxu1 %v1839_v30  ;;  %v225_v9 = vld [vmem:[#allocation5 + $0x2d8] sm:$0xff]  ;;  %v1885_v11 = vpack.c.bf16 %v200_v5, %v188_v3  ;;  %v1855_v12 = vpack.c.bf16 %v223_v7, %v211_v6  ;;  %v210_v13 = vld [vmem:[#allocation5 + $0x260] sm:$0xff]  ;;  %v212_v15 = vld [vmem:[#allocation5 + $0x270] sm:$0xff] }
  0xb2   :  { %v222_v14 = vld [vmem:[#allocation5 + $0x2c0] sm:$0xff]  ;;  %v1887_v16 = vpack.c.bf16 %v225_v9, %v213_v8  ;;  %v224_v17 = vld [vmem:[#allocation5 + $0x2d0] sm:$0xff]  ;;  %v235_v18 = vld [vmem:[#allocation5 + $0x328] sm:$0xff] }
  0xb3   :  { %1810 = vmatpush1.bf16.msra.mxu0 %v1809_v36  ;;  %v247_v19 = vld [vmem:[#allocation5 + $0x388] sm:$0xff]  ;;  %v237_v20 = vld [vmem:[#allocation5 + $0x338] sm:$0xff]  ;;  %v1857_v22 = vpack.c.bf16 %v222_v14, %v210_v13  ;;  %v1889_v23 = vpack.c.bf16 %v224_v17, %v212_v15  ;;  %v234_v25 = vld [vmem:[#allocation5 + $0x320] sm:$0xff] }
  0xb4   :  { %1842 = vmatpush1.bf16.msra.mxu1 %v1841_v37  ;;  %1844 = vmatprep.subr.bf16.mxu0 %v1843_v38  ;;  %v249_v21 = vld [vmem:[#allocation5 + $0x398] sm:$0xff]  ;;  %v1859_v24 = vpack.c.bf16 %v247_v19, %v235_v18  ;;  %v246_v26 = vld [vmem:[#allocation5 + $0x380] sm:$0xff]  ;;  %v236_v27 = vld [vmem:[#allocation5 + $0x330] sm:$0xff] }
  0xb5   :  { %1876 = vmatprep.subr.bf16.mxu1 %v1875_v42  ;;  %v1891_v28 = vpack.c.bf16 %v249_v21, %v237_v20  ;;  %v248_v29 = vld [vmem:[#allocation5 + $0x390] sm:$0xff]  ;;  %v259_v30 = vld [vmem:[#allocation5 + $0x3e8] sm:$0xff]  ;;  %v261_v32 = vld [vmem:[#allocation5 + $0x3f8] sm:$0xff]  ;;  %v1861_v34 = vpack.c.bf16 %v246_v26, %v234_v25 }
  0xb6   :  { %455 = vmatmul.mubr.f32.vlgmr.msra.gmra.mrb[0].mxu0 %v2574_v48  ;;  %v271_v31 = vld [vmem:[#allocation5 + $0x448] sm:$0xff]  ;;  %v273_v33 = vld [vmem:[#allocation5 + $0x458] sm:$0xff]  ;;  %v1893_v35 = vpack.c.bf16 %v248_v29, %v236_v27  ;;  %v258_v37 = vld [vmem:[#allocation5 + $0x3e0] sm:$0xff] }
  0xb7   :  { %526 = vmatmul.mubr.f32.vlgmr.msra.gmra.mrb[0].mxu1 %v2574_v48  ;;  %1846 = vmatpush1.bf16.msra.mxu0 %v1845_v49  ;;  %v1863_v36 = vpack.c.bf16 %v271_v31, %v259_v30  ;;  %v270_v38 = vld [vmem:[#allocation5 + $0x440] sm:$0xff]  ;;  %v260_v39 = vld [vmem:[#allocation5 + $0x3f0] sm:$0xff]  ;;  %v1895_v40 = vpack.c.bf16 %v273_v33, %v261_v32  ;;  %v283_v42 = vld [vmem:[#allocation5 + $0x4a8] sm:$0xff] }
  0xb8   :  { %1878 = vmatpush1.bf16.msra.mxu1 %v1877_v50  ;;  %1848 = vmatprep.subr.bf16.mxu0 %v1847_v51  ;;  %v272_v41 = vld [vmem:[#allocation5 + $0x450] sm:$0xff]  ;;  %v295_v43 = vld [vmem:[#allocation5 + $0x508] sm:$0xff]  ;;  %v285_v44 = vld [vmem:[#allocation5 + $0x4b8] sm:$0xff]  ;;  %v1865_v46 = vpack.c.bf16 %v270_v38, %v258_v37 }
  0xb9   :  { %1880 = vmatprep.subr.bf16.mxu1 %v1879_v55  ;;  %596 = vmatprep.mubr.f32.mxu0 %v2405_v0  ;;  %v297_v45 = vld [vmem:[#allocation5 + $0x518] sm:$0xff]  ;;  %v1897_v47 = vpack.c.bf16 %v272_v41, %v260_v39  ;;  %v1867_v49 = vpack.c.bf16 %v295_v43, %v283_v42  ;;  %v282_v50 = vld [vmem:[#allocation5 + $0x4a0] sm:$0xff]  ;;  %v284_v52 = vld [vmem:[#allocation5 + $0x4b0] sm:$0xff] }
  0xba   :  { %667 = vmatprep.mubr.f32.mxu1 %v2405_v0  ;;  %v294_v51 = vld [vmem:[#allocation5 + $0x500] sm:$0xff]  ;;  %v1899_v53 = vpack.c.bf16 %v297_v45, %v285_v44  ;;  %v296_v54 = vld [vmem:[#allocation5 + $0x510] sm:$0xff]  ;;  %v307_v55 = vld [vmem:[#allocation5 + $0x568] sm:$0xff] }
  0xbb   :  { %1850 = vmatpush1.bf16.msra.mxu0 %v1849_v61  ;;  %v319_v56 = vld [vmem:[#allocation5 + $0x5c8] sm:$0xff]  ;;  %v309_v57 = vld [vmem:[#allocation5 + $0x578] sm:$0xff]  ;;  %v1869_v59 = vpack.c.bf16 %v294_v51, %v282_v50  ;;  %v1901_v60 = vpack.c.bf16 %v296_v54, %v284_v52  ;;  %v308_v1 = vld [vmem:[#allocation5 + $0x570] sm:$0xff] }
  0xbc   :  { %1882 = vmatpush1.bf16.msra.mxu1 %v1881_v62  ;;  %1852 = vmatprep.subr.bf16.mxu0 %v1851_v63  ;;  %v321_v58 = vld [vmem:[#allocation5 + $0x5d8] sm:$0xff]  ;;  %v1871_v61 = vpack.c.bf16 %v319_v56, %v307_v55  ;;  %v306_v62 = vld [vmem:[#allocation5 + $0x560] sm:$0xff]  ;;  %v320_v3 = vld [vmem:[#allocation5 + $0x5d0] sm:$0xff] }
  0xbd   :  { %1884 = vmatprep.subr.bf16.mxu1 %v1883_v4  ;;  %v318_v63 = vld [vmem:[#allocation5 + $0x5c0] sm:$0xff]  ;;  %v1903_v2 = vpack.c.bf16 %v321_v58, %v309_v57  ;;  %v143_v4 = vld [vmem:[#allocation5 + $0x48] sm:$0xff]  ;;  %v145_v6 = vld [vmem:[#allocation5 + $0x58] sm:$0xff]  ;;  %v1905_v9 = vpack.c.bf16 %v320_v3, %v308_v1 }
  0xbe   :  { %v155_v5 = vld [vmem:[#allocation5 + $0xa8] sm:$0xff]  ;;  %v157_v7 = vld [vmem:[#allocation5 + $0xb8] sm:$0xff]  ;;  %v1873_v8 = vpack.c.bf16 %v318_v63, %v306_v62  ;;  %v144_v13 = vld [vmem:[#allocation5 + $0x50] sm:$0xff] }
  0xbf   :  { %1854 = vmatpush1.bf16.msra.mxu0 %v1853_v10  ;;  %v1907_v10 = vpack.c.bf16 %v155_v5, %v143_v4  ;;  %v1939_v14 = vpack.c.bf16 %v157_v7, %v145_v6  ;;  %v156_v15 = vld [vmem:[#allocation5 + $0xb0] sm:$0xff]  ;;  %v179_v17 = vld [vmem:[#allocation5 + $0x168] sm:$0xff]  ;;  %v169_v18 = vld [vmem:[#allocation5 + $0x118] sm:$0xff] }
  0xc0   :  { %1886 = vmatpush1.bf16.msra.mxu1 %v1885_v11  ;;  %1856 = vmatprep.subr.bf16.mxu0 %v1855_v12  ;;  %v142_v11 = vld [vmem:[#allocation5 + $0x40] sm:$0xff]  ;;  %v181_v19 = vld [vmem:[#allocation5 + $0x178] sm:$0xff]  ;;  %v1941_v21 = vpack.c.bf16 %v156_v15, %v144_v13  ;;  %v168_v25 = vld [vmem:[#allocation5 + $0x110] sm:$0xff] }
  0xc1   :  { %1888 = vmatprep.subr.bf16.mxu1 %v1887_v16  ;;  %v154_v12 = vld [vmem:[#allocation5 + $0xa0] sm:$0xff]  ;;  %v167_v16 = vld [vmem:[#allocation5 + $0x108] sm:$0xff]  ;;  %v1943_v26 = vpack.c.bf16 %v181_v19, %v169_v18  ;;  %v180_v27 = vld [vmem:[#allocation5 + $0x170] sm:$0xff] }
  0xc2   :  { %v1909_v20 = vpack.c.bf16 %v154_v12, %v142_v11  ;;  %v203_v29 = vld [vmem:[#allocation5 + $0x228] sm:$0xff]  ;;  %v193_v30 = vld [vmem:[#allocation5 + $0x1d8] sm:$0xff]  ;;  %v1945_v33 = vpack.c.bf16 %v180_v27, %v168_v25  ;;  %v192_v37 = vld [vmem:[#allocation5 + $0x1d0] sm:$0xff] }
  0xc3   :  { %1858 = vmatpush1.bf16.msra.mxu0 %v1857_v22  ;;  %v1911_v22 = vpack.c.bf16 %v179_v17, %v167_v16  ;;  %v205_v31 = vld [vmem:[#allocation5 + $0x238] sm:$0xff]  ;;  %v204_v39 = vld [vmem:[#allocation5 + $0x230] sm:$0xff]  ;;  %v227_v41 = vld [vmem:[#allocation5 + $0x2e8] sm:$0xff] }
  0xc4   :  { %1890 = vmatpush1.bf16.msra.mxu1 %v1889_v23  ;;  %1860 = vmatprep.subr.bf16.mxu0 %v1859_v24  ;;  %v166_v23 = vld [vmem:[#allocation5 + $0x100] sm:$0xff]  ;;  %v1947_v38 = vpack.c.bf16 %v205_v31, %v193_v30  ;;  %v217_v42 = vld [vmem:[#allocation5 + $0x298] sm:$0xff]  ;;  %v1949_v45 = vpack.c.bf16 %v204_v39, %v192_v37  ;;  %v216_v50 = vld [vmem:[#allocation5 + $0x290] sm:$0xff] }
  0xc5   :  { %1892 = vmatprep.subr.bf16.mxu1 %v1891_v28  ;;  %v178_v24 = vld [vmem:[#allocation5 + $0x160] sm:$0xff]  ;;  %v191_v28 = vld [vmem:[#allocation5 + $0x1c8] sm:$0xff]  ;;  %v229_v43 = vld [vmem:[#allocation5 + $0x2f8] sm:$0xff] }
  0xc6   :  { %v1913_v32 = vpack.c.bf16 %v178_v24, %v166_v23  ;;  %v1951_v51 = vpack.c.bf16 %v229_v43, %v217_v42  ;;  %v228_v52 = vld [vmem:[#allocation5 + $0x2f0] sm:$0xff]  ;;  %v251_v54 = vld [vmem:[#allocation5 + $0x3a8] sm:$0xff]  ;;  %v241_v55 = vld [vmem:[#allocation5 + $0x358] sm:$0xff] }
  0xc7   :  { %1862 = vmatpush1.bf16.msra.mxu0 %v1861_v34  ;;  %v1915_v34 = vpack.c.bf16 %v203_v29, %v191_v28  ;;  %v253_v56 = vld [vmem:[#allocation5 + $0x3b8] sm:$0xff]  ;;  %v1953_v58 = vpack.c.bf16 %v228_v52, %v216_v50  ;;  %v240_v62 = vld [vmem:[#allocation5 + $0x350] sm:$0xff]  ;;  %v275_v3 = vld [vmem:[#allocation5 + $0x468] sm:$0xff] }
  0xc8   :  { %1894 = vmatpush1.bf16.msra.mxu1 %v1893_v35  ;;  %1864 = vmatprep.subr.bf16.mxu0 %v1863_v36  ;;  %v190_v35 = vld [vmem:[#allocation5 + $0x1c0] sm:$0xff]  ;;  %v1955_v63 = vpack.c.bf16 %v253_v56, %v241_v55  ;;  %v252_v1 = vld [vmem:[#allocation5 + $0x3b0] sm:$0xff]  ;;  %v265_v4 = vld [vmem:[#allocation5 + $0x418] sm:$0xff] }
  0xc9   :  { %1896 = vmatprep.subr.bf16.mxu1 %v1895_v40  ;;  %v202_v36 = vld [vmem:[#allocation5 + $0x220] sm:$0xff]  ;;  %v215_v40 = vld [vmem:[#allocation5 + $0x288] sm:$0xff]  ;;  %v277_v5 = vld [vmem:[#allocation5 + $0x478] sm:$0xff]  ;;  %v1957_v7 = vpack.c.bf16 %v252_v1, %v240_v62 }
  0xca   :  { %v1917_v44 = vpack.c.bf16 %v202_v36, %v190_v35  ;;  %v264_v11 = vld [vmem:[#allocation5 + $0x410] sm:$0xff]  ;;  %v1959_v12 = vpack.c.bf16 %v277_v5, %v265_v4  ;;  %v299_v15 = vld [vmem:[#allocation5 + $0x528] sm:$0xff]  ;;  %v289_v16 = vld [vmem:[#allocation5 + $0x4d8] sm:$0xff] }
  0xcb   :  { %1866 = vmatpush1.bf16.msra.mxu0 %v1865_v46  ;;  %v1919_v46 = vpack.c.bf16 %v227_v41, %v215_v40  ;;  %v276_v13 = vld [vmem:[#allocation5 + $0x470] sm:$0xff]  ;;  %v301_v17 = vld [vmem:[#allocation5 + $0x538] sm:$0xff]  ;;  %v298_v23 = vld [vmem:[#allocation5 + $0x520] sm:$0xff] }
  0xcc   :  { %1898 = vmatpush1.bf16.msra.mxu1 %v1897_v47  ;;  %1868 = vmatprep.subr.bf16.mxu0 %v1867_v49  ;;  %v214_v47 = vld [vmem:[#allocation5 + $0x280] sm:$0xff]  ;;  %v1961_v19 = vpack.c.bf16 %v276_v13, %v264_v11  ;;  %v288_v24 = vld [vmem:[#allocation5 + $0x4d0] sm:$0xff]  ;;  %v311_v28 = vld [vmem:[#allocation5 + $0x588] sm:$0xff] }
  0xcd   :  { %1900 = vmatprep.subr.bf16.mxu1 %v1899_v53  ;;  %v226_v49 = vld [vmem:[#allocation5 + $0x2e0] sm:$0xff]  ;;  %v239_v53 = vld [vmem:[#allocation5 + $0x348] sm:$0xff]  ;;  %v313_v30 = vld [vmem:[#allocation5 + $0x598] sm:$0xff] }
  0xce   :  { %v1921_v57 = vpack.c.bf16 %v226_v49, %v214_v47  ;;  %v323_v29 = vld [vmem:[#allocation5 + $0x5e8] sm:$0xff]  ;;  %v312_v37 = vld [vmem:[#allocation5 + $0x590] sm:$0xff]  ;;  %v838_v52 = vld [vmem:[#allocation8 + $0x90] sm:$0xff] }
  0xcf   :  { %1870 = vmatpush1.bf16.msra.mxu0 %v1869_v59  ;;  %v1923_v59 = vpack.c.bf16 %v251_v54, %v239_v53  ;;  %v1935_v31 = vpack.c.bf16 %v323_v29, %v311_v28  ;;  %v836_v39 = vld [vmem:[#allocation8 + $0x80] sm:$0xff]  ;;  %v837_v41 = vld [vmem:[#allocation8 + $0x88] sm:$0xff]  ;;  %v839_v53 = vld [vmem:[#allocation8 + $0x98] sm:$0xff] }
  0xd0   :  { %1902 = vmatpush1.bf16.msra.mxu1 %v1901_v60  ;;  %1872 = vmatprep.subr.bf16.mxu0 %v1871_v61  ;;  %v238_v60 = vld [vmem:[#allocation5 + $0x340] sm:$0xff]  ;;  %v868_v42 = vld [vmem:[#allocation8 + $0x180] sm:$0xff]  ;;  %v869_v43 = vld [vmem:[#allocation8 + $0x188] sm:$0xff]  ;;  %v1975_v55 = vpack.c.bf16 %v839_v53, %v838_v52 }
  0xd1   :  { %1904 = vmatprep.subr.bf16.mxu1 %v1903_v2  ;;  %v250_v61 = vld [vmem:[#allocation5 + $0x3a0] sm:$0xff]  ;;  %v263_v2 = vld [vmem:[#allocation5 + $0x408] sm:$0xff]  ;;  %v821_v47 = vld [vmem:[#allocation8 + $0x8] sm:$0xff] }
  0xd2   :  { %v1925_v6 = vpack.c.bf16 %v250_v61, %v238_v60  ;;  %v852_v49 = vld [vmem:[#allocation8 + $0x100] sm:$0xff]  ;;  %v870_v56 = vld [vmem:[#allocation8 + $0x190] sm:$0xff]  ;;  %v823_v60 = vld [vmem:[#allocation8 + $0x18] sm:$0xff] }
  0xd3   :  { %1874 = vmatpush1.bf16.msra.mxu0 %v1873_v8  ;;  %v1927_v8 = vpack.c.bf16 %v275_v3, %v263_v2  ;;  %v854_v61 = vld [vmem:[#allocation8 + $0x110] sm:$0xff]  ;;  %v855_v62 = vld [vmem:[#allocation8 + $0x118] sm:$0xff]  ;;  %v840_v1 = vld [vmem:[#allocation8 + $0xa0] sm:$0xff] }
  0xd4   :  { %1906 = vmatpush1.bf16.msra.mxu1 %v1905_v9  ;;  %1908 = vmatprep.subr.bf16.mxu0 %v1907_v10  ;;  %v262_v9 = vld [vmem:[#allocation5 + $0x400] sm:$0xff]  ;;  %v841_v2 = vld [vmem:[#allocation8 + $0xa8] sm:$0xff]  ;;  %v872_v3 = vld [vmem:[#allocation8 + $0x1a0] sm:$0xff]  ;;  %v2009_v4 = vpack.c.bf16 %v855_v62, %v854_v61 }
  0xd5   :  { %1940 = vmatprep.subr.bf16.mxu1 %v1939_v14  ;;  %v274_v10 = vld [vmem:[#allocation5 + $0x460] sm:$0xff]  ;;  %v287_v14 = vld [vmem:[#allocation5 + $0x4c8] sm:$0xff]  ;;  %v1979_v5 = vpack.c.bf16 %v841_v2, %v840_v1  ;;  %v857_v11 = vld [vmem:[#allocation8 + $0x128] sm:$0xff] }
  0xd6   :  { %597 = vmatmul.mubr.f32.vlgmr.msra.gmra.mrb[2].mxu0 %v2574_v48  ;;  %v1929_v18 = vpack.c.bf16 %v274_v10, %v262_v9  ;;  %v856_v10 = vld [vmem:[#allocation8 + $0x120] sm:$0xff]  ;;  %v843_v13 = vld [vmem:[#allocation8 + $0xb8] sm:$0xff]  ;;  %v850_v62 = vld [vmem:[#allocation8 + $0xf0] sm:$0xff] }
  0xd7   :  { %668 = vmatmul.mubr.f32.vlgmr.msra.gmra.mrb[2].mxu1 %v2574_v48  ;;  %1910 = vmatpush1.bf16.msra.mxu0 %v1909_v20  ;;  %v1931_v20 = vpack.c.bf16 %v299_v15, %v287_v14  ;;  %v874_v14 = vld [vmem:[#allocation8 + $0x1b0] sm:$0xff] }
  0xd8   :  { %1942 = vmatpush1.bf16.msra.mxu1 %v1941_v21  ;;  %1912 = vmatprep.subr.bf16.mxu0 %v1911_v22  ;;  %v1963_v21 = vpack.c.bf16 %v301_v17, %v289_v16  ;;  %v286_v22 = vld [vmem:[#allocation5 + $0x4c0] sm:$0xff]  ;;  %v2013_v16 = vpack.c.bf16 %v857_v11, %v856_v10 }
  0xd9   :  { %1944 = vmatprep.subr.bf16.mxu1 %v1943_v26  ;;  %738 = vmatprep.mubr.f32.mxu0 %v2405_v0  ;;  %v1933_v25 = vpack.c.bf16 %v298_v23, %v286_v22  ;;  %v300_v26 = vld [vmem:[#allocation5 + $0x530] sm:$0xff]  ;;  %v859_v22 = vld [vmem:[#allocation8 + $0x138] sm:$0xff]  ;;  %v882_v1 = vld [vmem:[#allocation8 + $0x1f0] sm:$0xff] }
  0xda   :  { %809 = vmatprep.mubr.f32.mxu1 %v2405_v0  ;;  %v1965_v27 = vpack.c.bf16 %v300_v26, %v288_v24  ;;  %v844_v23 = vld [vmem:[#allocation8 + $0xc0] sm:$0xff]  ;;  %v845_v24 = vld [vmem:[#allocation8 + $0xc8] sm:$0xff] }
  0xdb   :  { %1914 = vmatpush1.bf16.msra.mxu0 %v1913_v32  ;;  %v325_v32 = vld [vmem:[#allocation5 + $0x5f8] sm:$0xff]  ;;  %v1987_v29 = vpack.c.bf16 %v845_v24, %v844_v23 }
  0xdc   :  { %1946 = vmatpush1.bf16.msra.mxu1 %v1945_v33  ;;  %1916 = vmatprep.subr.bf16.mxu0 %v1915_v34  ;;  %v310_v33 = vld [vmem:[#allocation5 + $0x580] sm:$0xff]  ;;  %v1967_v35 = vpack.c.bf16 %v325_v32, %v313_v30  ;;  %v877_v26 = vld [vmem:[#allocation8 + $0x1c8] sm:$0xff]  ;;  %v828_v30 = vld [vmem:[#allocation8 + $0x40] sm:$0xff] }
  0xdd   :  { %1948 = vmatprep.subr.bf16.mxu1 %v1947_v38  ;;  %v322_v34 = vld [vmem:[#allocation5 + $0x5e0] sm:$0xff]  ;;  %v324_v38 = vld [vmem:[#allocation5 + $0x5f0] sm:$0xff] }
  0xde   :  { %v1937_v36 = vpack.c.bf16 %v322_v34, %v310_v33  ;;  %v1969_v40 = vpack.c.bf16 %v324_v38, %v312_v37  ;;  %v860_v32 = vld [vmem:[#allocation8 + $0x140] sm:$0xff]  ;;  %v861_v34 = vld [vmem:[#allocation8 + $0x148] sm:$0xff]  ;;  %v878_v37 = vld [vmem:[#allocation8 + $0x1d0] sm:$0xff] }
  0xdf   :  { %1918 = vmatpush1.bf16.msra.mxu0 %v1917_v44  ;;  %v1971_v44 = vpack.c.bf16 %v837_v41, %v836_v39  ;;  %v879_v38 = vld [vmem:[#allocation8 + $0x1d8] sm:$0xff] }
  0xe0   :  { %1950 = vmatpush1.bf16.msra.mxu1 %v1949_v45  ;;  %1920 = vmatprep.subr.bf16.mxu0 %v1919_v46  ;;  %v2003_v45 = vpack.c.bf16 %v869_v43, %v868_v42  ;;  %v820_v46 = vld [vmem:[#allocation8] sm:$0xff]  ;;  %v830_v42 = vld [vmem:[#allocation8 + $0x50] sm:$0xff]  ;;  %v831_v43 = vld [vmem:[#allocation8 + $0x58] sm:$0xff] }
  0xe1   :  { %1952 = vmatprep.subr.bf16.mxu1 %v1951_v51  ;;  %v1973_v50 = vpack.c.bf16 %v821_v47, %v820_v46  ;;  %v853_v51 = vld [vmem:[#allocation8 + $0x108] sm:$0xff]  ;;  %v863_v46 = vld [vmem:[#allocation8 + $0x158] sm:$0xff]  ;;  %v848_v47 = vld [vmem:[#allocation8 + $0xe0] sm:$0xff]  ;;  %v1993_v52 = vpack.c.bf16 %v831_v43, %v830_v42 }
  0xe2   :  { %v2005_v54 = vpack.c.bf16 %v853_v51, %v852_v49  ;;  %v849_v49 = vld [vmem:[#allocation8 + $0xe8] sm:$0xff] }
  0xe3   :  { %1922 = vmatpush1.bf16.msra.mxu0 %v1921_v57  ;;  %v871_v57 = vld [vmem:[#allocation8 + $0x198] sm:$0xff]  ;;  %v881_v51 = vld [vmem:[#allocation8 + $0x1e8] sm:$0xff] }
  0xe4   :  { %1954 = vmatpush1.bf16.msra.mxu1 %v1953_v58  ;;  %1924 = vmatprep.subr.bf16.mxu0 %v1923_v59  ;;  %v822_v58 = vld [vmem:[#allocation8 + $0x10] sm:$0xff]  ;;  %v2007_v59 = vpack.c.bf16 %v871_v57, %v870_v56  ;;  %v832_v56 = vld [vmem:[#allocation8 + $0x60] sm:$0xff]  ;;  %v833_v57 = vld [vmem:[#allocation8 + $0x68] sm:$0xff] }
  0xe5   :  { %1956 = vmatprep.subr.bf16.mxu1 %v1955_v63  ;;  %v1977_v63 = vpack.c.bf16 %v823_v60, %v822_v58  ;;  %v864_v58 = vld [vmem:[#allocation8 + $0x160] sm:$0xff]  ;;  %v865_v60 = vld [vmem:[#allocation8 + $0x168] sm:$0xff] }
  0xe6   :  { %v2029_v61 = vpack.c.bf16 %v865_v60, %v864_v58 }
  0xe7   :  { %1926 = vmatpush1.bf16.msra.mxu0 %v1925_v6  ;;  %v873_v6 = vld [vmem:[#allocation8 + $0x1a8] sm:$0xff] }
  0xe8   :  { %1958 = vmatpush1.bf16.msra.mxu1 %v1957_v7  ;;  %1928 = vmatprep.subr.bf16.mxu0 %v1927_v8  ;;  %v824_v7 = vld [vmem:[#allocation8 + $0x20] sm:$0xff]  ;;  %v825_v8 = vld [vmem:[#allocation8 + $0x28] sm:$0xff]  ;;  %v2011_v9 = vpack.c.bf16 %v873_v6, %v872_v3  ;;  %v883_v3 = vld [vmem:[#allocation8 + $0x1f8] sm:$0xff] }
  0xe9   :  { %1960 = vmatprep.subr.bf16.mxu1 %v1959_v12  ;;  %v842_v12 = vld [vmem:[#allocation8 + $0xb0] sm:$0xff]  ;;  %v1981_v15 = vpack.c.bf16 %v825_v8, %v824_v7  ;;  %v2031_v6 = vpack.c.bf16 %v883_v3, %v882_v1 }
  0xea   :  { %v1983_v17 = vpack.c.bf16 %v843_v13, %v842_v12  ;;  %v866_v8 = vld [vmem:[#allocation8 + $0x170] sm:$0xff] }
  0xeb   :  { %1930 = vmatpush1.bf16.msra.mxu0 %v1929_v18  ;;  %v826_v18 = vld [vmem:[#allocation8 + $0x30] sm:$0xff] }
  0xec   :  { %1962 = vmatpush1.bf16.msra.mxu1 %v1961_v19  ;;  %1932 = vmatprep.subr.bf16.mxu0 %v1931_v20  ;;  %v827_v19 = vld [vmem:[#allocation8 + $0x38] sm:$0xff]  ;;  %v858_v20 = vld [vmem:[#allocation8 + $0x130] sm:$0xff] }
  0xed   :  { %1964 = vmatprep.subr.bf16.mxu1 %v1963_v21  ;;  %v2017_v28 = vpack.c.bf16 %v859_v22, %v858_v20 }
  0xef   :  { %1934 = vmatpush1.bf16.msra.mxu0 %v1933_v25  ;;  %v876_v25 = vld [vmem:[#allocation8 + $0x1c0] sm:$0xff] }
  0xf0   :  { %1966 = vmatpush1.bf16.msra.mxu1 %v1965_v27  ;;  %1936 = vmatprep.subr.bf16.mxu0 %v1935_v31  ;;  %v1985_v27 = vpack.c.bf16 %v827_v19, %v826_v18  ;;  %v829_v31 = vld [vmem:[#allocation8 + $0x48] sm:$0xff]  ;;  %v2019_v33 = vpack.c.bf16 %v877_v26, %v876_v25  ;;  %v326_v18 = vld [vmem:[#allocation7] sm:$0xff] }
  0xf1   :  { %1968 = vmatprep.subr.bf16.mxu1 %v1967_v35  ;;  %v846_v35 = vld [vmem:[#allocation8 + $0xd0] sm:$0xff]  ;;  %v1989_v39 = vpack.c.bf16 %v829_v31, %v828_v30 }
  0xf3   :  { %1938 = vmatpush1.bf16.msra.mxu0 %v1937_v36  ;;  %v847_v36 = vld [vmem:[#allocation8 + $0xd8] sm:$0xff] }
  0xf4   :  { %1970 = vmatpush1.bf16.msra.mxu1 %v1969_v40  ;;  %1972 = vmatprep.subr.bf16.mxu0 %v1971_v44  ;;  %v2021_v40 = vpack.c.bf16 %v861_v34, %v860_v32  ;;  %v1991_v41 = vpack.c.bf16 %v847_v36, %v846_v35  ;;  %v862_v44 = vld [vmem:[#allocation8 + $0x150] sm:$0xff] }
  0xf5   :  { %2004 = vmatprep.subr.bf16.mxu1 %v2003_v45  ;;  %v2023_v45 = vpack.c.bf16 %v879_v38, %v878_v37  ;;  %v2025_v53 = vpack.c.bf16 %v863_v46, %v862_v44 }
  0xf6   :  { %739 = vmatmul.mubr.f32.vlgmr.msra.gmra.mrb[4].mxu0 %v2574_v48 }
  0xf7   :  { %810 = vmatmul.mubr.f32.vlgmr.msra.gmra.mrb[4].mxu1 %v2574_v48  ;;  %1974 = vmatpush3.bf16.msra.mxu0 %v1973_v50  ;;  %v875_v48 = vld [vmem:[#allocation8 + $0x1b8] sm:$0xff]  ;;  %v880_v50 = vld [vmem:[#allocation8 + $0x1e0] sm:$0xff] }
  0xf8   :  { %2006 = vmatpush3.bf16.msra.mxu1 %v2005_v54  ;;  %1976 = vmatprep.subr.bf16.mxu0 %v1975_v55  ;;  %v2015_v21 = vpack.c.bf16 %v875_v48, %v874_v14  ;;  %v1995_v54 = vpack.c.bf16 %v849_v49, %v848_v47  ;;  %v2027_v55 = vpack.c.bf16 %v881_v51, %v880_v50  ;;  %v330_v48 = vlaneseq }
  0xf9   :  { %2008 = vmatprep.subr.bf16.mxu1 %v2007_v59  ;;  %v1997_v59 = vpack.c.bf16 %v833_v57, %v832_v56 }
  0xfb   :  { %1978 = vmatpush3.bf16.msra.mxu0 %v1977_v63  ;;  %v851_v63 = vld [vmem:[#allocation8 + $0xf8] sm:$0xff] }
  0xfc   :  { %2010 = vmatpush3.bf16.msra.mxu1 %v2009_v4  ;;  %1980 = vmatprep.subr.bf16.mxu0 %v1979_v5  ;;  %v1999_v2 = vpack.c.bf16 %v851_v63, %v850_v62  ;;  %v834_v4 = vld [vmem:[#allocation8 + $0x70] sm:$0xff]  ;;  %v835_v5 = vld [vmem:[#allocation8 + $0x78] sm:$0xff] }
  0xfd   :  { %2012 = vmatprep.subr.bf16.mxu1 %v2011_v9  ;;  %v2001_v7 = vpack.c.bf16 %v835_v5, %v834_v4  ;;  %v867_v9 = vld [vmem:[#allocation8 + $0x178] sm:$0xff] }
  0xfe   :  { %v2033_v10 = vpack.c.bf16 %v867_v9, %v866_v8 }
  0xff   :  { %1982 = vmatpush3.bf16.msra.mxu0 %v1981_v15  ;;  %v2586_v15 = vshrl.u32 %v330_v48, 7  ;;  %v1085_v48 = vld [vmem:[#allocation10] sm:$0xff] }
 0x100   :  { %2014 = vmatpush3.bf16.msra.mxu1 %v2013_v16  ;;  %1984 = vmatprep.subr.bf16.mxu0 %v1983_v17 }
 0x101   :  { %2016 = vmatprep.subr.bf16.mxu1 %v2015_v21  ;;  %v332_v16 = vsub.s32 0, %v2586_v15  ;;  %v348_v17 = vsub.s32 4, %v2586_v15  ;;  %v340_v19 = vsub.s32 2, %v2586_v15  ;;  %v336_v20 = vsub.s32 1, %v2586_v15 }
 0x102   :  { %v356_v21 = vsub.s32 6, %v2586_v15  ;;  %v352_v22 = vsub.s32 5, %v2586_v15  ;;  %v344_v23 = vsub.s32 3, %v2586_v15  ;;  %v360_v24 = vsub.s32 7, %v2586_v15 }
 0x103   :  { %1986 = vmatpush3.bf16.msra.mxu0 %v1985_v27  ;;  %v333_v25 = vrot.slane %v326_v18, %v332_v16  ;;  %v349_v26 = vrot.slane %v326_v18, %v348_v17  ;;  %v341_v27 = vrot.slane %v326_v18, %v340_v19 }
 0x104   :  { %2018 = vmatpush3.bf16.msra.mxu1 %v2017_v28  ;;  %1988 = vmatprep.subr.bf16.mxu0 %v1987_v29  ;;  %v337_v28 = vrot.slane %v326_v18, %v336_v20  ;;  %v357_v29 = vrot.slane %v326_v18, %v356_v21  ;;  %v353_v30 = vrot.slane %v326_v18, %v352_v22  ;;  %v1094_v21 = vld [vmem:[#allocation10 + $0x48] sm:$0xff] }
 0x105   :  { %2020 = vmatprep.subr.bf16.mxu1 %v2019_v33  ;;  %v345_v31 = vrot.slane %v326_v18, %v344_v23  ;;  %v361_v32 = vrot.slane %v326_v18, %v360_v24  ;;  %v1089_v18 = vld [vmem:[#allocation10 + $0x20] sm:$0xff]  ;;  %v1098_v22 = vld [vmem:[#allocation10 + $0x68] sm:$0xff] }
 0x106   :  { %v2037_v24 = vpack.c.bf16 %v1089_v18, %v1085_v48  ;;  %v1273_v48 = vld [vmem:[#allocation11 + $0x30] sm:$0xff]  ;;  %v1291_v18 = vld [vmem:[#allocation11 + $0xc0] sm:$0xff] }
 0x107   :  { %1990 = vmatpush3.bf16.msra.mxu0 %v1989_v39 }
 0x108   :  { %2022 = vmatpush3.bf16.msra.mxu1 %v2021_v40  ;;  %1992 = vmatprep.subr.bf16.mxu0 %v1991_v41 }
 0x109   :  { %2024 = vmatprep.subr.bf16.mxu1 %v2023_v45 }
 0x10b   :  { %1994 = vmatpush3.bf16.msra.mxu0 %v1993_v52 }
 0x10c   :  { %2026 = vmatpush3.bf16.msra.mxu1 %v2025_v53  ;;  %1996 = vmatprep.subr.bf16.mxu0 %v1995_v54 }
 0x10d   :  { %2028 = vmatprep.subr.bf16.mxu1 %v2027_v55 }
 0x10f   :  { %1998 = vmatpush3.bf16.msra.mxu0 %v1997_v59 }
 0x110   :  { %2030 = vmatpush3.bf16.msra.mxu1 %v2029_v61  ;;  %2000 = vmatprep.subr.bf16.mxu0 %v1999_v2 }
 0x111   :  { %2032 = vmatprep.subr.bf16.mxu1 %v2031_v6 }
 0x113   :  { %2002 = vmatpush3.bf16.msra.mxu0 %v2001_v7 }
 0x114   :  { %2034 = vmatpush3.bf16.msra.mxu1 %v2033_v10 }
 0x189   :  { %v456_v11 = vpop.f32.mrb[0].mxu0 }
 0x18a   :  { %v527_v12 = vpop.f32.mrb[0].mxu1  ;;  %v458_v13 = vpop.f32.mrb[1].mxu0  ;;  %v457_v34 = vadd.f32 %v456_v11, %v333_v25  ;;  %v2039_v25 = vpack.c.bf16 %v1098_v22, %v1094_v21  ;;  %v1292_v21 = vld [vmem:[#allocation11 + $0xc8] sm:$0xff] }
 0x18b   :  { %v529_v14 = vpop.f32.mrb[1].mxu1  ;;  %v528_v38 = vadd.f32 %v527_v12, %v341_v27  ;;  %v459_v39 = vadd.f32 %v458_v13, %v337_v28  ;;  %v1086_v13 = vld [vmem:[#allocation10 + $0x8] sm:$0xff]  ;;  %v1097_v27 = vld [vmem:[#allocation10 + $0x60] sm:$0xff] }
 0x18c   :  { %v530_v43 = vadd.f32 %v529_v14, %v345_v31  ;;  %v1090_v14 = vld [vmem:[#allocation10 + $0x28] sm:$0xff] }
 0x18d   :  { %v2035_v17 = vpack.c.bf16 %v1090_v14, %v1086_v13  ;;  %v1102_v28 = vld [vmem:[#allocation10 + $0x88] sm:$0xff] }
 0x18f   :  { %2036 = vmatprep.subr.bf16.mxu1 %v2035_v17  ;;  %v1274_v17 = vld [vmem:[#allocation11 + $0x38] sm:$0xff] }
 0x190   :  { %v2081_v22 = vpack.c.bf16 %v1274_v17, %v1273_v48  ;;  %v1317_v48 = vld [vmem:[#allocation11 + $0x190] sm:$0xff]  ;;  %v1318_v17 = vld [vmem:[#allocation11 + $0x198] sm:$0xff] }
 0x1a9   :  { %v598_v33 = vpop.f32.mrb[2].mxu0 }
 0x1aa   :  { %v599_v35 = vadd.f32 %v598_v33, %v349_v26  ;;  %v669_v36 = vpop.f32.mrb[2].mxu1  ;;  %v600_v37 = vpop.f32.mrb[3].mxu0  ;;  %v1093_v26 = vld [vmem:[#allocation10 + $0x40] sm:$0xff] }
 0x1ab   :  { %v670_v40 = vadd.f32 %v669_v36, %v357_v29  ;;  %v601_v41 = vadd.f32 %v600_v37, %v353_v30  ;;  %v671_v42 = vpop.f32.mrb[3].mxu1  ;;  %v1106_v29 = vld [vmem:[#allocation10 + $0xa8] sm:$0xff]  ;;  %v2041_v30 = vpack.c.bf16 %v1097_v27, %v1093_v26  ;;  %v1105_v33 = vld [vmem:[#allocation10 + $0xa0] sm:$0xff]  ;;  %v1293_v27 = vld [vmem:[#allocation11 + $0xd0] sm:$0xff] }
 0x1ac   :  { %v816_v44 = vmul.f32 %v599_v35, %v457_v34  ;;  %v672_v45 = vadd.f32 %v671_v42, %v361_v32  ;;  %v2043_v31 = vpack.c.bf16 %v1106_v29, %v1102_v28  ;;  %v1101_v32 = vld [vmem:[#allocation10 + $0x80] sm:$0xff]  ;;  %v1276_v26 = vld [vmem:[#allocation11 + $0x48] sm:$0xff]  ;;  %v1294_v28 = vld [vmem:[#allocation11 + $0xd8] sm:$0xff] }
 0x1ad   :  { %v818_v46 = vmul.f32 %v670_v40, %v528_v38  ;;  %v817_v47 = vmul.f32 %v601_v41, %v459_v39  ;;  %v2045_v34 = vpack.c.bf16 %v1105_v33, %v1101_v32  ;;  %v1110_v40 = vld [vmem:[#allocation10 + $0xc8] sm:$0xff]  ;;  %v1278_v32 = vld [vmem:[#allocation11 + $0x58] sm:$0xff]  ;;  %v1295_v33 = vld [vmem:[#allocation11 + $0xe0] sm:$0xff] }
 0x1ae   :  { %v819_v49 = vmul.f32 %v672_v45, %v530_v43  ;;  %v1114_v41 = vld [vmem:[#allocation10 + $0xe8] sm:$0xff]  ;;  %v1113_v45 = vld [vmem:[#allocation10 + $0xe0] sm:$0xff] }
 0x1af   :  { %948 = vmatprep.mubr.f32.mxu0 %v817_v47  ;;  %v2047_v43 = vpack.c.bf16 %v1114_v41, %v1110_v40  ;;  %v1088_v47 = vld [vmem:[#allocation10 + $0x18] sm:$0xff] }
 0x1b0   :  { %1018 = vmatprep.mubr.f32.mxu1 %v819_v49  ;;  %949 = vmatmul.mubr.f32.vlgmr.msra.gmra.mrb[6].mxu0 %v816_v44  ;;  %v1109_v44 = vld [vmem:[#allocation10 + $0xc0] sm:$0xff]  ;;  %v1092_v49 = vld [vmem:[#allocation10 + $0x38] sm:$0xff] }
 0x1b1   :  { %1019 = vmatmul.mubr.f32.vlgmr.msra.gmra.mrb[6].mxu1 %v818_v46  ;;  %v2049_v46 = vpack.c.bf16 %v1113_v45, %v1109_v44  ;;  %v1091_v44 = vld [vmem:[#allocation10 + $0x30] sm:$0xff]  ;;  %v1096_v45 = vld [vmem:[#allocation10 + $0x58] sm:$0xff] }
 0x1b2   :  { %1185 = vmatprep.mubr.f32.mxu1 %v2405_v0  ;;  %2038 = vmatpush1.bf16.msra.mxu1 %v2037_v24  ;;  %v2083_v24 = vpack.c.bf16 %v1292_v21, %v1291_v18  ;;  %v2103_v21 = vpack.c.bf16 %v1318_v17, %v1317_v48  ;;  %v1471_v48 = vld [vmem:[#allocation13] sm:$0xff]  ;;  %v1472_v17 = vld [vmem:[#allocation13 + $0x8] sm:$0xff] }
 0x1b3   :  { %2040 = vmatprep.subr.bf16.mxu1 %v2039_v25  ;;  %v1275_v25 = vld [vmem:[#allocation11 + $0x40] sm:$0xff] }
 0x1b4   :  { %v2085_v29 = vpack.c.bf16 %v1276_v26, %v1275_v25  ;;  %v1319_v25 = vld [vmem:[#allocation11 + $0x1a0] sm:$0xff]  ;;  %v1320_v26 = vld [vmem:[#allocation11 + $0x1a8] sm:$0xff] }
 0x1b6   :  { %2042 = vmatpush1.bf16.msra.mxu1 %v2041_v30  ;;  %v2087_v30 = vpack.c.bf16 %v1294_v28, %v1293_v27  ;;  %v2107_v28 = vpack.c.bf16 %v1320_v26, %v1319_v25  ;;  %v2132_v26 = vpack.c.bf16 %v1472_v17, %v1471_v48 }
 0x1b7   :  { %2044 = vmatprep.subr.bf16.mxu1 %v2043_v31  ;;  %v1277_v31 = vld [vmem:[#allocation11 + $0x50] sm:$0xff] }
 0x1ba   :  { %2046 = vmatpush1.bf16.msra.mxu1 %v2045_v34  ;;  %v1296_v34 = vld [vmem:[#allocation11 + $0xe8] sm:$0xff] }
 0x1bb   :  { %2048 = vmatprep.subr.bf16.mxu1 %v2047_v43  ;;  %v1087_v43 = vld [vmem:[#allocation10 + $0x10] sm:$0xff] }
 0x1be   :  { %2050 = vmatpush1.bf16.msra.mxu1 %v2049_v46  ;;  %v1100_v46 = vld [vmem:[#allocation10 + $0x78] sm:$0xff] }
 0x1c9   :  { %v2605_v50 = vpop.f32.mrb[4].mxu0 }
 0x1ca   :  { %v2607_v51 = vpop.f32.mrb[4].mxu1  ;;  %v2609_v52 = vpop.f32.mrb[5].mxu0 }
 0x1cb   :  { %v2611_v53 = vpop.f32.mrb[5].mxu1 }
 0x283   :  { %v1619_v54 = vpop.f32.mrb[6].mxu0 }
 0x284   :  { %v1654_v55 = vpop.f32.mrb[6].mxu1  ;;  %v1620_v56 = vpop.f32.mrb[7].mxu0 }
 0x285   :  { %v1621_v57 = vadd.f32 %v1620_v56, %v1619_v54  ;;  %v1655_v58 = vpop.f32.mrb[7].mxu1  ;;  %v2051_v54 = vpack.c.bf16 %v1092_v49, %v1088_v47  ;;  %v1283_v56 = vld [vmem:[#allocation11 + $0x80] sm:$0xff] }
 0x286   :  { %v1656_v59 = vadd.f32 %v1655_v58, %v1654_v55  ;;  %v1267_v58 = vld [vmem:[#allocation11] sm:$0xff] }
 0x287   :  { %2052 = vmatprep.subr.bf16.mxu1 %v2051_v54 }
 0x288   :  { %v1021_v60 = vadd.f32 %v1656_v59, %v1621_v57  ;;  %v1284_v57 = vld [vmem:[#allocation11 + $0x88] sm:$0xff] }
 0x289   :  { %v2067_v59 = vpack.c.bf16 %v1284_v57, %v1283_v56  ;;  %v2053_v56 = vpack.c.bf16 %v1091_v44, %v1087_v43  ;;  %v1323_v44 = vld [vmem:[#allocation11 + $0x1c0] sm:$0xff] }
 0x28a   :  { %1033 = vrot.lane.b32.xlu1 %v1021_v60, %s2406_s7  ;;  %1025 = vrot.lane.b32.xlu0 %v1021_v60, %s2407_s28 }
 0x28b   :  { %2068 = vmatprep.subr.bf16.mxu0 %v2067_v59  ;;  %v1095_v59 = vld [vmem:[#allocation10 + $0x50] sm:$0xff] }
 0x28e   :  { %1029 = vrot.lane.b32.xlu0 %v1021_v60, %s2393_s16 }
 0x2fc   :  { %v1026_v61 = vpop.permute.xlu0 %1025  ;;  %v1034_v2 = vpop.permute.xlu1 %1033 }
 0x2fd   :  { %v1028_v62 = vmax.f32 %v1021_v60, %v1026_v61  ;;  %v1285_v61 = vld [vmem:[#allocation11 + $0x90] sm:$0xff] }
 0x300   :  { %v1030_v63 = vpop.permute.xlu0 %1029 }
 0x301   :  { %v1032_v1 = vmax.f32 %v1028_v62, %v1030_v63  ;;  %v1286_v62 = vld [vmem:[#allocation11 + $0x98] sm:$0xff] }
 0x303   :  { %v1036_v3 = vmax.f32 %v1032_v1, %v1034_v2  ;;  %v2071_v1 = vpack.c.bf16 %v1286_v62, %v1285_v61  ;;  %v1269_v2 = vld [vmem:[#allocation11 + $0x10] sm:$0xff]  ;;  %v1104_v61 = vld [vmem:[#allocation10 + $0x98] sm:$0xff] }
 0x304   :  { %v1108_v62 = vld [vmem:[#allocation10 + $0xb8] sm:$0xff] }
 0x305   :  { %1041 = vrot.lane.b32.xlu0 %v1036_v3, %s2402_s11  ;;  %1038 = vrot.lane.b32.xlu1 %v1036_v3, %s2408_s14 }
 0x309   :  { %1044 = vrot.lane.b32.xlu1 %v1036_v3, %s2409_s15 }
 0x377   :  { %v1039_v4 = vpop.permute.xlu1 %1038  ;;  %v1042_v5 = vpop.permute.xlu0 %1041 }
 0x378   :  { %v1048_v6 = vsel %vm1047_vm0, %v1036_v3, %v1039_v4  ;;  %v1270_v3 = vld [vmem:[#allocation11 + $0x18] sm:$0xff]  ;;  %v1287_v4 = vld [vmem:[#allocation11 + $0xa0] sm:$0xff] }
 0x379   :  { %v1050_v7 = vsel %vm1049_vm1, %v1048_v6, %v1042_v5  ;;  %v1288_v5 = vld [vmem:[#allocation11 + $0xa8] sm:$0xff]  ;;  %v2073_v6 = vpack.c.bf16 %v1270_v3, %v1269_v2  ;;  %v1107_v2 = vld [vmem:[#allocation10 + $0xb0] sm:$0xff]  ;;  %v1112_v3 = vld [vmem:[#allocation10 + $0xd8] sm:$0xff] }
 0x37b   :  { %v1045_v8 = vpop.permute.xlu1 %1044 }
 0x37c   :  { %v1052_v9 = vsel %vm1051_vm2, %v1050_v7, %v1045_v8  ;;  %v2075_v7 = vpack.c.bf16 %v1288_v5, %v1287_v4  ;;  %v1271_v8 = vld [vmem:[#allocation11 + $0x20] sm:$0xff]  ;;  %v1116_v4 = vld [vmem:[#allocation10 + $0xf8] sm:$0xff] }
 0x37d   :  { %v1053_v10 = vsub.f32 %v1021_v60, %v1052_v9  ;;  %v1268_v60 = vld [vmem:[#allocation11 + $0x8] sm:$0xff] }
 0x37e   :  { %v2069_v63 = vpack.c.bf16 %v1268_v60, %v1267_v58  ;;  %v1272_v9 = vld [vmem:[#allocation11 + $0x28] sm:$0xff]  ;;  %v2055_v58 = vpack.c.bf16 %v1100_v46, %v1096_v45  ;;  %v1099_v60 = vld [vmem:[#allocation10 + $0x70] sm:$0xff] }
 0x37f   :  { %v1054_v11 = vmul.f32 1.442695, %v1053_v10  ;;  %v1289_v10 = vld [vmem:[#allocation11 + $0xb0] sm:$0xff]  ;;  %v2077_v13 = vpack.c.bf16 %v1272_v9, %v1271_v8  ;;  %v1315_v8 = vld [vmem:[#allocation11 + $0x180] sm:$0xff]  ;;  %v1316_v9 = vld [vmem:[#allocation11 + $0x188] sm:$0xff] }
 0x380   :  { %2070 = vmatpush3.bf16.msra.mxu0 %v2069_v63  ;;  %v2059_v63 = vpack.c.bf16 %v1108_v62, %v1104_v61  ;;  %v1324_v45 = vld [vmem:[#allocation11 + $0x1c8] sm:$0xff]  ;;  %v1327_v61 = vld [vmem:[#allocation11 + $0x1e0] sm:$0xff] }
 0x381   :  { %2177 = vpow2.f32 %v1054_v11  ;;  %2072 = vmatprep.subr.bf16.mxu0 %v2071_v1  ;;  %v1290_v11 = vld [vmem:[#allocation11 + $0xb8] sm:$0xff]  ;;  %v1103_v1 = vld [vmem:[#allocation10 + $0x90] sm:$0xff]  ;;  %v2115_v46 = vpack.c.bf16 %v1324_v45, %v1323_v44  ;;  %v1328_v62 = vld [vmem:[#allocation11 + $0x1e8] sm:$0xff] }
 0x382   :  { %v2079_v14 = vpack.c.bf16 %v1290_v11, %v1289_v10  ;;  %v2061_v5 = vpack.c.bf16 %v1107_v2, %v1103_v1  ;;  %v2099_v11 = vpack.c.bf16 %v1316_v9, %v1315_v8  ;;  %v1311_v1 = vld [vmem:[#allocation11 + $0x160] sm:$0xff]  ;;  %v1312_v2 = vld [vmem:[#allocation11 + $0x168] sm:$0xff]  ;;  %v2410_v9 = vmov 0.0|0.0   ;;  %v1485_v44 = vld [vmem:[#allocation13 + $0x70] sm:$0xff] }
 0x383   :  { %v1486_v45 = vld [vmem:[#allocation13 + $0x78] sm:$0xff] }
 0x384   :  { %2074 = vmatpush3.bf16.msra.mxu0 %v2073_v6  ;;  %v1111_v6 = vld [vmem:[#allocation10 + $0xd0] sm:$0xff] }
 0x385   :  { %2076 = vmatprep.subr.bf16.mxu0 %v2075_v7  ;;  %v1115_v7 = vld [vmem:[#allocation10 + $0xf0] sm:$0xff] }
 0x386   :  { %v2065_v10 = vpack.c.bf16 %v1115_v7, %v1111_v6  ;;  %v1313_v6 = vld [vmem:[#allocation11 + $0x170] sm:$0xff]  ;;  %v1314_v7 = vld [vmem:[#allocation11 + $0x178] sm:$0xff] }
 0x387   :  { %v2129_v8 = vpack.c.bf16 %v1314_v7, %v1313_v6 }
 0x388   :  { %2078 = vmatpush3.bf16.msra.mxu0 %v2077_v13  ;;  %v1299_v13 = vld [vmem:[#allocation11 + $0x100] sm:$0xff] }
 0x389   :  { %2080 = vmatprep.subr.bf16.mxu0 %v2079_v14  ;;  %v1300_v14 = vld [vmem:[#allocation11 + $0x108] sm:$0xff] }
 0x38a   :  { %v2101_v18 = vpack.c.bf16 %v1300_v14, %v1299_v13 }
 0x38b   :  { %v2621_v12 = vpop.eup %2177 }
 0x38c   :  { %1061 = vrot.lane.b32.xlu1 %v2621_v12, %s2393_s16  ;;  %1057 = vrot.lane.b32.xlu0 %v2621_v12, %s2407_s28  ;;  %s2412_s16 = smov [#allocation16]  }
 0x38d   :  { %2082 = vmatpush3.bf16.msra.mxu0 %v2081_v22  ;;  %v1301_v22 = vld [vmem:[#allocation11 + $0x110] sm:$0xff] }
 0x38e   :  { %2084 = vmatprep.subr.bf16.mxu0 %v2083_v24  ;;  %v1302_v24 = vld [vmem:[#allocation11 + $0x118] sm:$0xff] }
 0x38f   :  { %v2105_v27 = vpack.c.bf16 %v1302_v24, %v1301_v22 }
 0x390   :  { %1065 = vrot.lane.b32.xlu0 %v2621_v12, %s2406_s7 }
 0x391   :  { %2086 = vmatpush3.bf16.msra.mxu0 %v2085_v29  ;;  %v1303_v29 = vld [vmem:[#allocation11 + $0x120] sm:$0xff] }
 0x392   :  { %2088 = vmatprep.subr.bf16.mxu0 %v2087_v30  ;;  %v1304_v30 = vld [vmem:[#allocation11 + $0x128] sm:$0xff] }
 0x3fe   :  { %v1058_v35 = vpop.permute.xlu0 %1057  ;;  %v1062_v37 = vpop.permute.xlu1 %1061 }
 0x3ff   :  { %v1060_v36 = vadd.f32 %v2621_v12, %v1058_v35  ;;  %v2089_v35 = vpack.c.bf16 %v1278_v32, %v1277_v31  ;;  %v2109_v31 = vpack.c.bf16 %v1304_v30, %v1303_v29  ;;  %v1321_v32 = vld [vmem:[#allocation11 + $0x1b0] sm:$0xff]  ;;  %v1475_v29 = vld [vmem:[#allocation13 + $0x20] sm:$0xff] }
 0x401   :  { %v1064_v38 = vadd.f32 %v1062_v37, %v1060_v36  ;;  %v2091_v36 = vpack.c.bf16 %v1296_v34, %v1295_v33  ;;  %v1279_v37 = vld [vmem:[#allocation11 + $0x60] sm:$0xff]  ;;  %2090 = vmatpush3.bf16.msra.mxu0 %v2089_v35  ;;  %v1322_v33 = vld [vmem:[#allocation11 + $0x1b8] sm:$0xff]  ;;  %v1297_v35 = vld [vmem:[#allocation11 + $0xf0] sm:$0xff] }
 0x402   :  { %v1066_v39 = vpop.permute.xlu0 %1065  ;;  %v2111_v34 = vpack.c.bf16 %v1322_v33, %v1321_v32 }
 0x403   :  { %v1068_v42 = vadd.f32 %v1066_v39, %v1064_v38  ;;  %v1280_v38 = vld [vmem:[#allocation11 + $0x68] sm:$0xff]  ;;  %2092 = vmatprep.subr.bf16.mxu0 %v2091_v36  ;;  %v1298_v36 = vld [vmem:[#allocation11 + $0xf8] sm:$0xff] }
 0x404   :  { %v2093_v39 = vpack.c.bf16 %v1280_v38, %v1279_v37  ;;  %v1305_v37 = vld [vmem:[#allocation11 + $0x130] sm:$0xff]  ;;  %v2095_v38 = vpack.c.bf16 %v1298_v36, %v1297_v35 }
 0x405   :  { %2179 = vrcp.f32 %v1068_v42 }
 0x406   :  { %2094 = vmatpush3.bf16.msra.mxu0 %v2093_v39  ;;  %v1306_v39 = vld [vmem:[#allocation11 + $0x138] sm:$0xff] }
 0x407   :  { %2096 = vmatprep.subr.bf16.mxu0 %v2095_v38  ;;  %v1478_v38 = vld [vmem:[#allocation13 + $0x38] sm:$0xff] }
 0x40f   :  { %v2629_v55 = vpop.eup %2179 }
 0x410   :  { %1075 = vrot.lane.b32.xlu0 %v2629_v55, %s2402_s11  ;;  %1072 = vrot.lane.b32.xlu1 %v2629_v55, %s2408_s14  ;;  %s1571_s11 = sshll.u32 %s2412_s16, 4  ;;  %s1572_s11 = int_to_ptr.vmem [resolvable:$true] %s1571_s11 }
 0x411   :  { %s2357_s18 = scalar_lea.vmem %s1572_s11, 128  ;;  %p2362_p9 = scmp.lt.s32.totalorder %s1572_s11, %s1572_s11 }
 0x412   :  { %p2358_p8 = scmp.ne.s32.totalorder %s1572_s11, %s2357_s18  ;;  %p2363_p10 = scmp.lt.s32.totalorder %s2357_s18, %s2357_s18 }
 0x414   :  { %1078 = vrot.lane.b32.xlu1 %v2629_v55, %s2409_s15  ;;  %p2364_p11 = por %p2363_p10, %p2362_p9 }
 0x416   :  { %p2365_p12 = pnand %p2364_p11, %p2358_p8 }
 0x482   :  { %v1073_v40 = vpop.permute.xlu1 %1072  ;;  %v1076_v41 = vpop.permute.xlu0 %1075 }
 0x483   :  { %v1081_v42 = vsel %vm1047_vm0, %v2629_v55, %v1073_v40  ;;  %v2057_v55 = vpack.c.bf16 %v1099_v60, %v1095_v59  ;;  %v1281_v40 = vld [vmem:[#allocation11 + $0x70] sm:$0xff]  ;;  %v1310_v60 = vld [vmem:[#allocation11 + $0x158] sm:$0xff] }
 0x484   :  { %v1082_v47 = vsel %vm1049_vm1, %v1081_v42, %v1076_v41  ;;  %v1282_v41 = vld [vmem:[#allocation11 + $0x78] sm:$0xff]  ;;  %v2113_v42 = vpack.c.bf16 %v1306_v39, %v1305_v37  ;;  %v1477_v37 = vld [vmem:[#allocation13 + $0x30] sm:$0xff] }
 0x485   :  { %v2097_v43 = vpack.c.bf16 %v1282_v41, %v1281_v40  ;;  %v2141_v39 = vpack.c.bf16 %v1478_v38, %v1477_v37  ;;  %v1480_v40 = vld [vmem:[#allocation13 + $0x48] sm:$0xff]  ;;  %v1482_v41 = vld [vmem:[#allocation13 + $0x58] sm:$0xff] }
 0x486   :  { %v1079_v49 = vpop.permute.xlu1 %1078 }
 0x487   :  { %v1083_v54 = vsel %vm1051_vm2, %v1082_v47, %v1079_v49  ;;  %2098 = vmatpush3.bf16.msra.mxu0 %v2097_v43  ;;  %v1307_v47 = vld [vmem:[#allocation11 + $0x140] sm:$0xff]  ;;  %v1308_v49 = vld [vmem:[#allocation11 + $0x148] sm:$0xff] }
 0x488   :  { %v1084_v57 = vmul.f32 %v2621_v12, %v1083_v54  ;;  %v2063_v12 = vpack.c.bf16 %v1116_v4, %v1112_v3  ;;  %v2117_v54 = vpack.c.bf16 %v1308_v49, %v1307_v47  ;;  %v2125_v3 = vpack.c.bf16 %v1312_v2, %v1311_v1  ;;  %v1329_v4 = vld [vmem:[#allocation11 + $0x1f0] sm:$0xff]  ;;  %2131 = vmatprep.subr.bf16.mxu0 %v2410_v9 }
 0x48a   :  { %1584 = vmatmul.mubr.msk.f32.vlgmr.msra.gmra.mrb[8].mxu1 %vm1117_vm3, %v1084_v57 }
 0x48b   :  { %2054 = vmatpush1.bf16.msra.mxu1 %v2053_v56  ;;  %1256 = vmatprep.mubr.f32.mxu1 %v2405_v0  ;;  %v1325_v56 = vld [vmem:[#allocation11 + $0x1d0] sm:$0xff] }
 0x48c   :  { %2056 = vmatprep.subr.bf16.mxu1 %v2055_v58  ;;  %v1309_v58 = vld [vmem:[#allocation11 + $0x150] sm:$0xff] }
 0x48f   :  { %2058 = vmatpush1.bf16.msra.mxu1 %v2057_v55  ;;  %v2121_v55 = vpack.c.bf16 %v1310_v60, %v1309_v58  ;;  %v1586_v60 = vld [vmem:[#allocation14] ss:$0 sm:$0xff] }
 0x490   :  { %2060 = vmatprep.subr.bf16.mxu1 %v2059_v63  ;;  %v2123_v63 = vpack.c.bf16 %v1328_v62, %v1327_v61 }
 0x493   :  { %2062 = vmatpush1.bf16.msra.mxu1 %v2061_v5  ;;  %v1330_v5 = vld [vmem:[#allocation11 + $0x1f8] sm:$0xff] }
 0x494   :  { %2064 = vmatprep.subr.bf16.mxu1 %v2063_v12  ;;  %v2127_v12 = vpack.c.bf16 %v1330_v5, %v1329_v4 }
 0x497   :  { %2066 = vmatpush1.bf16.msra.mxu1 %v2065_v10  ;;  %v327_v10 = vld [vmem:[#allocation7 + $0x8] sm:$0xf] }
 0x498   :  { %2100 = vmatprep.subr.bf16.mxu1 %v2099_v11  ;;  %v365_v11 = vrot.slane %v327_v10, %v332_v16  ;;  %v369_v13 = vrot.slane %v327_v10, %v336_v20  ;;  %v1476_v20 = vld [vmem:[#allocation13 + $0x28] sm:$0xff]  ;;  %v373_v30 = vrot.slane %v327_v10, %v340_v19  ;;  %v1479_v19 = vld [vmem:[#allocation13 + $0x40] sm:$0xff] }
 0x499   :  { %v2144_v15 = vpack.c.bf16 %v1480_v40, %v1479_v19 }
 0x49a   :  { %1585 = vmatmul.mubr.msk.f32.vlgmr.msra.gmra.mrb[10].mxu1 %vm1117_vm3, %v1084_v57  ;;  %v1326_v57 = vld [vmem:[#allocation11 + $0x1d8] sm:$0xff]  ;;  %v741_v14 = vadd.f32 %v2605_v50, %v365_v11  ;;  %v2138_v50 = vpack.c.bf16 %v1476_v20, %v1475_v29 }
 0x49b   :  { %2102 = vmatpush3.bf16.msra.mxu1 %v2101_v18  ;;  %v2119_v59 = vpack.c.bf16 %v1326_v57, %v1325_v56  ;;  %v743_v18 = vadd.f32 %v2609_v52, %v369_v13  ;;  %v377_v52 = vrot.slane %v327_v10, %v344_v23  ;;  %v1481_v23 = vld [vmem:[#allocation13 + $0x50] sm:$0xff] }
 0x49c   :  { %2104 = vmatprep.subr.bf16.mxu1 %v2103_v21 }
 0x49d   :  { %v814_v32 = vadd.f32 %v2611_v53, %v377_v52  ;;  %v1483_v53 = vld [vmem:[#allocation13 + $0x60] sm:$0xff] }
 0x49f   :  { %2106 = vmatpush3.bf16.msra.mxu1 %v2105_v27  ;;  %v1473_v27 = vld [vmem:[#allocation13 + $0x10] sm:$0xff] }
 0x4a0   :  { %2108 = vmatprep.subr.bf16.mxu1 %v2107_v28  ;;  %v1474_v28 = vld [vmem:[#allocation13 + $0x18] sm:$0xff] }
 0x4a1   :  { %v2135_v16 = vpack.c.bf16 %v1474_v28, %v1473_v27 }
 0x4a3   :  { %2110 = vmatpush3.bf16.msra.mxu1 %v2109_v31  ;;  %v812_v31 = vadd.f32 %v2607_v51, %v373_v30  ;;  %v2147_v51 = vpack.c.bf16 %v1482_v41, %v1481_v23 }
 0x4a4   :  { %2112 = vmatprep.subr.bf16.mxu1 %v2111_v34 }
 0x4a7   :  { %2114 = vmatpush3.bf16.msra.mxu1 %v2113_v42  ;;  %v1484_v42 = vld [vmem:[#allocation13 + $0x68] sm:$0xff] }
 0x4a8   :  { %2116 = vmatprep.subr.bf16.mxu1 %v2115_v46  ;;  %v2150_v43 = vpack.c.bf16 %v1484_v42, %v1483_v53  ;;  %v2153_v46 = vpack.c.bf16 %v1486_v45, %v1485_v44 }
 0x4ab   :  { %2118 = vmatpush3.bf16.msra.mxu1 %v2117_v54 }
 0x4ac   :  { %2120 = vmatprep.subr.bf16.mxu1 %v2119_v59 }
 0x4af   :  { %2122 = vmatpush3.bf16.msra.mxu1 %v2121_v55 }
 0x4b0   :  { %2124 = vmatprep.subr.bf16.mxu1 %v2123_v63 }
 0x4b3   :  { %2126 = vmatpush3.bf16.msra.mxu1 %v2125_v3 }
 0x4b4   :  { %2128 = vmatprep.subr.bf16.mxu1 %v2127_v12 }
 0x4b7   :  { %2130 = vmatpush3.bf16.msra.mxu1 %v2129_v8 }
 0x55d   :  { %v1187_v21 = vpop.f32.mrb[8].mxu1 }
 0x55e   :  { %v1263_v22 = vmul.f32 %v1187_v21, %v741_v14  ;;  %v1189_v24 = vpop.f32.mrb[9].mxu1 }
 0x55f   :  { %v1264_v25 = vmul.f32 %v1189_v24, %v743_v18 }
 0x561   :  { %1395 = vmatprep.mubr.f32.mxu0 %v1264_v25 }
 0x562   :  { %1396 = vmatmul.mubr.f32.vlgmr.msra.gmra.mrb[8].mxu0 %v1263_v22 }
 0x563   :  { %2133 = vmatpush3.bf16.msra.mxu0 %v2132_v26  ;;  %1776 = vmatprep.mubr.msk.f32.mxu0 %vm2411_vm4, %v2405_v0 }
 0x564   :  { %2134 = vmatprep.subr.bf16.mxu0 %v2410_v9 }
 0x567   :  { %2136 = vmatpush3.bf16.msra.mxu0 %v2135_v16 }
 0x568   :  { %2137 = vmatprep.subr.bf16.mxu0 %v2410_v9 }
 0x56b   :  { %2139 = vmatpush3.bf16.msra.mxu0 %v2138_v50 }
 0x56c   :  { %2140 = vmatprep.subr.bf16.mxu0 %v2410_v9 }
 0x56d   :  { %v1258_v33 = vpop.f32.mrb[10].mxu1 }
 0x56e   :  { %v1265_v34 = vmul.f32 %v1258_v33, %v812_v31  ;;  %v1260_v35 = vpop.f32.mrb[11].mxu1 }
 0x56f   :  { %v1266_v36 = vmul.f32 %v1260_v35, %v814_v32  ;;  %2142 = vmatpush3.bf16.msra.mxu0 %v2141_v39 }
 0x570   :  { %2143 = vmatprep.subr.bf16.mxu0 %v2410_v9 }
 0x571   :  { %1465 = vmatprep.mubr.f32.mxu1 %v1266_v36 }
 0x572   :  { %1466 = vmatmul.mubr.f32.vlgmr.msra.gmra.mrb[12].mxu1 %v1265_v34 }
 0x573   :  { %2145 = vmatpush3.bf16.msra.mxu0 %v2144_v15 }
 0x574   :  { %2146 = vmatprep.subr.bf16.mxu0 %v2410_v9 }
 0x577   :  { %2148 = vmatpush3.bf16.msra.mxu0 %v2147_v51 }
 0x578   :  { %2149 = vmatprep.subr.bf16.mxu0 %v2410_v9 }
 0x57b   :  { %2151 = vmatpush3.bf16.msra.mxu0 %v2150_v43 }
 0x57c   :  { %2152 = vmatprep.subr.bf16.mxu0 %v2410_v9 }
 0x57f   :  { %2154 = vmatpush3.bf16.msra.mxu0 %v2153_v46 }
 0x635   :  { %v1689_v47 = vpop.f32.mrb[8].mxu0 }
 0x636   :  { %v1690_v49 = vpop.f32.mrb[9].mxu0 }
 0x637   :  { %v1691_v54 = vadd.f32 %v1690_v49, %v1689_v47 }
 0x645   :  { %v1724_v56 = vpop.f32.mrb[12].mxu1 }
 0x646   :  { %v1725_v57 = vpop.f32.mrb[13].mxu1 }
 0x647   :  { %v1726_v58 = vadd.f32 %v1725_v57, %v1724_v56 }
 0x649   :  { %v1468_v59 = vadd.f32 %v1726_v58, %v1691_v54 }
 0x64b   :  { %1777 = vmatmul.mubr.f32.vlgmr.msra.gmra.mrb[10].mxu0 %v1468_v59 }
 0x71e   :  { %v1560_v61 = vpop.f32.mrb[10].mxu0 }
 0x71f   :  { %v1561_v62 = vadd.f32 %v1586_v60, %v1560_v61  ;;  %v1778_v55 = vpop.f32.mrb[11].mxu0 }
 0x721   :  { %1564 = vst [vmem:[#allocation16] sm:$0xff] %v1561_v62 }
 0x722   :  { %2368 = shalt.err (!%p2365_p12)
}
 0x723   :  { %s2369_s22 = scalar_lea.hbm %s2678_s8, 128 }
 0x724   :  { %p2370_p13 = scmp.ne.s32.totalorder %s2678_s8, %s2369_s22  ;;  %p2373_p0 = scmp.lt.u32.totalorder %s2369_s22, %s2678_s8 }
 0x726   :  { %p2375_p1 = pnand %p2373_p0, %p2370_p13 }
 0x728   :  { %2378 = shalt.err (!%p2375_p1)
}
 0x729   :  { %1574 = dma.vmem_to_hbm [thread:$0]  %s1572_s11, 128, %s2678_s8, [#allocation4]  }
 0x72a   :  { %2389 = dma.done.wait [#allocation4], 128  }
 0x72b   :  { %2390 = vsyncadd [#allocation4], 4294967168 }
 0x72c   :  { %1578 = vsyncpa [#allocation3], 1 }
 0x72d   :  { %1579 = vsyncpa [#allocation6], 1 }
 0x72e   :  { %1580 = vsyncpa [#allocation9], 1 }
 0x72f   :  { %1581 = vsyncpa [#allocation12], 1 }
 0x730   :  { %1582 = vsyncpa [#allocation15], 1 }
 0x731   :  { %1583 = vsyncpa [#allocation4], 1 }

</bundles_post_ra>
